<compile_context>
chip_gen: v6e
topology: v6e:2x2x1
jax: 0.10.0
libtpu: 0.0.40
codegen_flags: <defaults>
</compile_context>

<pallas_src>
import functools

import numpy as np
import jax
import jax.numpy as jnp
from jax import lax
from jax.experimental import pallas as pl
from jax.experimental.pallas import tpu as pltpu


_MARGIN_BYTES = 16 * 1024 * 1024


def _spatial_transformer_kernel(starts_ref, src_ref, locs_ref, out_ref, *,
                                H, W, WIN, compute_dtype, precision):
    # starts_ref : (N, n_tiles) int32 (SMEM) — 128-aligned flattened window start
    # src_ref    : (1, C, HW)   whole source image (flattened spatial), f32
    # locs_ref   : (1, 2, T)    absolute sample coordinates (row, col) for this tile
    # out_ref    : (1, C, T)    (C < 8 ⇒ sublane-padded store; acceptable, C is small)
    T = out_ref.shape[-1]
    HW = src_ref.shape[-1]

    if WIN == HW:
        start = 0
        src_win = src_ref[0]                                 # (C, HW)
    else:
        b = pl.program_id(0)
        ti = pl.program_id(1)
        start = pl.multiple_of(starts_ref[b, ti], 128)       # lane-aligned dynamic start
        src_win = src_ref[0, :, pl.ds(start, WIN)]           # (C, WIN) flow-bounded band

    locs = locs_ref[0]                                       # (2, T)
    y = locs[0:1, :]                                         # (1, T) absolute row coord
    x = locs[1:2, :]                                         # (1, T) absolute col coord
    # align_corners=True: the module's normalize followed by grid_sample's
    # un-normalize is the identity, so (y, x) are directly pixel coordinates.
    y0 = jnp.floor(y)
    x0 = jnp.floor(x)
    ty = y - y0
    tx = x - x0

    zero = jnp.zeros((), compute_dtype)
    iota_q = lax.broadcasted_iota(jnp.int32, (WIN, T), 0)    # window-relative pixel index

    def corner(dy, dx):
        yc = y0 + dy
        xc = x0 + dx
        w = (ty if dy else 1.0 - ty) * (tx if dx else 1.0 - tx)           # (1, T)
        valid = (yc >= 0) & (yc <= H - 1) & (xc >= 0) & (xc <= W - 1)
        # Out-of-range corners get idx = -1 (never matches iota >= 0) -> zeros padding.
        idx = jnp.where(valid, yc * W + xc, -1.0).astype(jnp.int32) - start
        return (iota_q == idx), w.astype(compute_dtype)

    # Select-chain: the valid corner indices of one output pixel are always
    # distinct and invalid corners never match, so chained selects are exact
    # and avoid a zeros-init + 4 accumulating adds on the dominant (WIN, T) temp.
    eq, w = corner(0, 0)
    s_t = jnp.where(eq, w, zero)
    for dy, dx in ((0, 1), (1, 0), (1, 1)):
        eq, w = corner(dy, dx)
        s_t = jnp.where(eq, w, s_t)

    out = jnp.dot(src_win.astype(compute_dtype), s_t,
                  preferred_element_type=jnp.float32, precision=precision)
    out_ref[0] = out.astype(out_ref.dtype)


def _tpu_vmem_caps():
    try:
        cap = int(pltpu.get_tpu_info().vmem_capacity_bytes)
    except Exception:
        cap = 128 * 1024 * 1024
    # Keep kernel working set well under physical VMEM: ~48 MiB budget on
    # 64 MiB chips (v7x), ~100 MiB on 128 MiB chips (v5e/v6e).
    hard_cap = min(cap - _MARGIN_BYTES, 100 * 1024 * 1024)
    return cap, hard_cap


def _vmem_bytes(C, HW, T, WIN, item):
    temps = (8 + 2 * item) * WIN * T          # iota(i32) + eq mask + s_t + one live select temp
    bufs = (2 * 4 * C * HW                    # double-buffered whole-src block
            + 2 * 4 * C * T + 2 * 4 * 2 * T   # out / locs blocks
            + 2 * item * C * WIN)             # in-kernel src window slice (+ cast)
    return int(temps + bufs) + (2 << 20)


def _plan(locs_y, N, C, H, W, item):
    """Pick the output-pixel tile T, the static source-window length WIN and the
    per-(batch, tile) 128-aligned window starts.  `locs_y` is a concrete numpy
    (N, HW) array of absolute sampled rows, or None (then WIN = HW)."""
    HW = H * W
    cap, hard_cap = _tpu_vmem_caps()

    cands = [t for t in range(128, min(HW, 2048) + 1, 128) if HW % t == 0]
    if not cands:
        cands = [HW]
    if HW >= 256:
        # keep >= 2 tiles so the tile axis can be sharded across v7x's 2 TCs at N=1
        cands = [t for t in cands if t <= HW // 2] or cands

    def window_for(T):
        n_t = HW // T
        if locs_y is None or HW % 128 != 0:
            return HW, np.zeros((N, n_t), np.int32)
        y = locs_y.reshape(N, n_t, T)
        lo = np.clip(np.floor(y.min(axis=-1)), 0, H - 1).astype(np.int64)
        hi = np.clip(np.floor(y.max(axis=-1)) + 1, 0, H - 1).astype(np.int64)
        start = (lo * W) // 128 * 128                       # align down to lanes
        end = (hi + 1) * W
        win = int(np.max(end - start))
        win = -(-win // 128) * 128                          # align up to lanes
        if win >= HW:
            return HW, np.zeros((N, n_t), np.int32)
        start = np.minimum(start, HW - win)                 # stays a multiple of 128
        return win, start.astype(np.int32)

    best = None
    for T in cands:                                         # ascending -> keep largest feasible
        WIN, starts = window_for(T)
        need = _vmem_bytes(C, HW, T, WIN, item)
        if need + _MARGIN_BYTES <= hard_cap:
            best = (T, WIN, starts, need + _MARGIN_BYTES)
    if best is None:
        # Nothing fits the generation-aware budget: smallest tile, true need
        # (bounded only by near-physical VMEM; do not silently under-provision).
        T = cands[0]
        WIN, starts = window_for(T)
        need = _vmem_bytes(C, HW, T, WIN, item)
        best = (T, WIN, starts, min(need + _MARGIN_BYTES, cap - (4 << 20)))
    return best


def spatial_transformer(src, flow, *, compute_dtype=jnp.float32):
    """src: (N, C, H, W), flow: (N, 2, H, W) -> (N, C, H, W) float32.

    Matches SpatialTransformer (2-D, mode='bilinear', align_corners=True, zeros
    padding): flow channel 0 is the row (y) displacement, channel 1 the col (x)
    displacement.  compute_dtype=jnp.bfloat16 halves the dominant (WIN, T)
    build/matmul footprint on v6e/v7x at ~3 decimal digits of accuracy cost
    (keep float32 on v5e: no bf16 VPU)."""
    # TODO(synk): only the 2-D mode='bilinear' path is implemented; the module's
    # default 3-D (trilinear) img_size and mode='nearest' are not supported.
    N, C, H, W = src.shape
    assert flow.shape == (N, 2, H, W)
    HW = H * W
    assert HW < 2 ** 24, "float32 index arithmetic requires H*W < 2^24"

    src_f = src.reshape(N, C, HW).astype(jnp.float32)

    # Fold the module's identity grid into the flow host-side: absolute sample
    # coordinates grid + flow (removes one DMA'd input and its (2, T) block).
    gy = jnp.broadcast_to(jnp.arange(H, dtype=jnp.float32)[:, None], (H, W)).reshape(HW)
    gx = jnp.broadcast_to(jnp.arange(W, dtype=jnp.float32)[None, :], (H, W)).reshape(HW)
    locs_f = jnp.stack([gy, gx], axis=0)[None] + flow.reshape(N, 2, HW).astype(jnp.float32)

    # Flow-bounded source row-band per (batch, tile): computed in plain numpy
    # when the inputs are concrete; falls back to the whole image under jit.
    try:
        locs_y = np.asarray(jax.device_get(locs_f[:, 0, :]))
    except Exception:
        locs_y = None

    item = jnp.dtype(compute_dtype).itemsize
    T, WIN, starts_np, vmem_limit = _plan(locs_y, N, C, H, W, item)
    n_tiles = HW // T
    starts = jnp.asarray(starts_np, dtype=jnp.int32)

    precision = (lax.Precision.HIGHEST if jnp.dtype(compute_dtype) == jnp.float32
                 else lax.Precision.DEFAULT)
    kernel = functools.partial(_spatial_transformer_kernel, H=H, W=W, WIN=WIN,
                               compute_dtype=compute_dtype, precision=precision)

    out = pl.pallas_call(
        kernel,
        out_shape=jax.ShapeDtypeStruct((N, C, HW), jnp.float32),
        grid_spec=pltpu.PrefetchScalarGridSpec(
            num_scalar_prefetch=1,
            grid=(N, n_tiles),                  # tile axis innermost: src DMA'd once per batch
            in_specs=[
                pl.BlockSpec((1, C, HW), lambda n, t, starts: (n, 0, 0)),   # whole source image
                pl.BlockSpec((1, 2, T), lambda n, t, starts: (n, 0, t)),    # sample-coord tile
            ],
            out_specs=pl.BlockSpec((1, C, T), lambda n, t, starts: (n, 0, t)),
        ),
        # Both axes parallel; n_tiles >= 2 whenever HW >= 256 so the tile axis
        # can feed both v7x TensorCores even at batch=1 (no-op on v5e/v6e).
        compiler_params=pltpu.CompilerParams(
            dimension_semantics=("parallel", "parallel"),
            vmem_limit_bytes=int(vmem_limit)),
    )(starts, src_f, locs_f)
    return out.reshape(N, C, H, W)


def _reference(src, flow):
    """Pure-JAX bilinear grid_sample(align_corners=True, zeros padding)."""
    N, C, H, W = src.shape
    gy, gx = jnp.meshgrid(jnp.arange(H, dtype=jnp.float32),
                          jnp.arange(W, dtype=jnp.float32), indexing='ij')
    y = gy[None] + flow[:, 0]
    x = gx[None] + flow[:, 1]
    y0 = jnp.floor(y)
    x0 = jnp.floor(x)
    ty = y - y0
    tx = x - x0
    out = jnp.zeros_like(src)
    n_idx = jnp.arange(N)[:, None, None, None]
    c_idx = jnp.arange(C)[None, :, None, None]
    for dy in (0, 1):
        for dx in (0, 1):
            yc = y0 + dy
            xc = x0 + dx
            w = (ty if dy else 1.0 - ty) * (tx if dx else 1.0 - tx)
            valid = (yc >= 0) & (yc <= H - 1) & (xc >= 0) & (xc <= W - 1)
            w = jnp.where(valid, w, 0.0)
            yi = jnp.clip(yc, 0, H - 1).astype(jnp.int32)
            xi = jnp.clip(xc, 0, W - 1).astype(jnp.int32)
            vals = src[n_idx, c_idx, yi[:, None], xi[:, None]]
            out = out + w[:, None] * vals
    return out


if __name__ == "__main__":
    key = jax.random.PRNGKey(0)
    k1, k2, k3, k4 = jax.random.split(key, 4)

    # Test 1: small image, moderate flow (exercises zeros padding; window ~= whole image).
    N, C, H, W = 2, 4, 16, 16
    src = jax.random.normal(k1, (N, C, H, W), dtype=jnp.float32)
    flow = 1.5 * jax.random.normal(k2, (N, 2, H, W), dtype=jnp.float32)
    out = jax.block_until_ready(spatial_transformer(src, flow))
    ref = jax.block_until_ready(_reference(src, flow))
    assert out.shape == (N, C, H, W)
    err = float(jnp.max(jnp.abs(out - ref)))
    assert jnp.allclose(out, ref, atol=1e-4, rtol=1e-4), err

    # Test 2: taller image with lane-wide rows -> exercises the scalar-prefetched
    # flow-bounded row band (dynamic 128-aligned source slice inside the kernel).
    N2, C2, H2, W2 = 1, 2, 64, 128
    src2 = jax.random.normal(k3, (N2, C2, H2, W2), dtype=jnp.float32)
    flow2 = 1.5 * jax.random.normal(k4, (N2, 2, H2, W2), dtype=jnp.float32)
    out2 = jax.block_until_ready(spatial_transformer(src2, flow2))
    ref2 = jax.block_until_ready(_reference(src2, flow2))
    err2 = float(jnp.max(jnp.abs(out2 - ref2)))
    assert jnp.allclose(out2, ref2, atol=1e-4, rtol=1e-4), err2

    print("KERNEL_OK")
</pallas_src>

<mosaic_0001>
module attributes {stable_mosaic.version = 11 : i64} {
  func.func @_spatial_transformer_kernel(%arg0: i32, %arg1: i32, %arg2: memref<2x2xi32, #tpu.memory_space<smem>>, %arg3: memref<1x4x256xf32, #tpu.memory_space<vmem>>, %arg4: memref<1x2x128xf32, #tpu.memory_space<vmem>>, %arg5: memref<1x4x128xf32, #tpu.memory_space<vmem>>) attributes {dimension_semantics = [#tpu.dimension_semantics<parallel>, #tpu.dimension_semantics<parallel>], iteration_bounds = array<i64: 2, 2>, scalar_prefetch = 1 : i64, scratch_operands = 0 : i64, tpu.core_type = #tpu.core_type<tc>, window_params = [{transform_indices = @transform_0, window_bounds = array<i64: 1, 4, 256>}, {transform_indices = @transform_1, window_bounds = array<i64: 1, 2, 128>}, {transform_indices = @transform_2, window_bounds = array<i64: 1, 4, 128>}]} {
    %c0 = arith.constant 0 : index
    %c0_0 = arith.constant 0 : index
    %c0_1 = arith.constant 0 : index
    %0 = vector.load %arg3[%c0, %c0_0, %c0_1] : memref<1x4x256xf32, #tpu.memory_space<vmem>>, vector<1x4x256xf32>
    %1 = vector.shape_cast %0 : vector<1x4x256xf32> to vector<4x256xf32>
    %c0_2 = arith.constant 0 : index
    %c0_3 = arith.constant 0 : index
    %c0_4 = arith.constant 0 : index
    %2 = vector.load %arg4[%c0_2, %c0_3, %c0_4] : memref<1x2x128xf32, #tpu.memory_space<vmem>>, vector<1x2x128xf32>
    %3 = vector.shape_cast %2 : vector<1x2x128xf32> to vector<2x128xf32>
    %4 = vector.extract_strided_slice %3 {offsets = [0, 0], sizes = [1, 128], strides = [1, 1]} : vector<2x128xf32> to vector<1x128xf32>
    %5 = vector.extract_strided_slice %3 {offsets = [1, 0], sizes = [1, 128], strides = [1, 1]} : vector<2x128xf32> to vector<1x128xf32>
    %6 = math.floor %4 : vector<1x128xf32>
    %7 = math.floor %5 : vector<1x128xf32>
    %8 = arith.subf %4, %6 : vector<1x128xf32>
    %9 = arith.subf %5, %7 : vector<1x128xf32>
    %10 = tpu.iota {dimensions = array<i32: 0>} : vector<256x128xi32>
    %cst = arith.constant 0.000000e+00 : f32
    %11 = vector.broadcast %cst : f32 to vector<1x128xf32>
    %12 = arith.addf %6, %11 : vector<1x128xf32>
    %cst_5 = arith.constant 0.000000e+00 : f32
    %13 = vector.broadcast %cst_5 : f32 to vector<1x128xf32>
    %14 = arith.addf %7, %13 : vector<1x128xf32>
    %cst_6 = arith.constant 1.000000e+00 : f32
    %15 = vector.broadcast %cst_6 : f32 to vector<1x128xf32>
    %16 = arith.subf %15, %8 : vector<1x128xf32>
    %cst_7 = arith.constant 1.000000e+00 : f32
    %17 = vector.broadcast %cst_7 : f32 to vector<1x128xf32>
    %18 = arith.subf %17, %9 : vector<1x128xf32>
    %19 = arith.mulf %16, %18 : vector<1x128xf32>
    %cst_8 = arith.constant 0.000000e+00 : f32
    %20 = vector.broadcast %cst_8 : f32 to vector<1x128xf32>
    %21 = arith.cmpf oge, %12, %20 : vector<1x128xf32>
    %cst_9 = arith.constant 1.500000e+01 : f32
    %22 = vector.broadcast %cst_9 : f32 to vector<1x128xf32>
    %23 = arith.cmpf ole, %12, %22 : vector<1x128xf32>
    %24 = arith.andi %21, %23 : vector<1x128xi1>
    %cst_10 = arith.constant 0.000000e+00 : f32
    %25 = vector.broadcast %cst_10 : f32 to vector<1x128xf32>
    %26 = arith.cmpf oge, %14, %25 : vector<1x128xf32>
    %27 = arith.andi %24, %26 : vector<1x128xi1>
    %cst_11 = arith.constant 1.500000e+01 : f32
    %28 = vector.broadcast %cst_11 : f32 to vector<1x128xf32>
    %29 = arith.cmpf ole, %14, %28 : vector<1x128xf32>
    %30 = arith.andi %27, %29 : vector<1x128xi1>
    %cst_12 = arith.constant 1.600000e+01 : f32
    %31 = vector.broadcast %cst_12 : f32 to vector<1x128xf32>
    %32 = arith.mulf %12, %31 : vector<1x128xf32>
    %33 = arith.addf %32, %14 : vector<1x128xf32>
    %cst_13 = arith.constant -1.000000e+00 : f32
    %34 = vector.broadcast %cst_13 : f32 to vector<1x128xf32>
    %35 = arith.select %30, %33, %34 : vector<1x128xi1>, vector<1x128xf32>
    %36 = arith.fptosi %35 : vector<1x128xf32> to vector<1x128xi32>
    %c0_i32 = arith.constant 0 : i32
    %37 = vector.broadcast %c0_i32 : i32 to vector<1x128xi32>
    %38 = arith.subi %36, %37 : vector<1x128xi32>
    %39 = vector.broadcast %38 : vector<1x128xi32> to vector<256x128xi32>
    %40 = arith.cmpi eq, %10, %39 : vector<256x128xi32>
    %cst_14 = arith.constant 0.000000e+00 : f32
    %41 = vector.shape_cast %19 : vector<1x128xf32> to vector<1x128xf32>
    %42 = vector.broadcast %41 : vector<1x128xf32> to vector<256x128xf32>
    %43 = vector.broadcast %cst_14 : f32 to vector<256x128xf32>
    %44 = arith.select %40, %42, %43 : vector<256x128xi1>, vector<256x128xf32>
    %cst_15 = arith.constant 0.000000e+00 : f32
    %45 = vector.broadcast %cst_15 : f32 to vector<1x128xf32>
    %46 = arith.addf %6, %45 : vector<1x128xf32>
    %cst_16 = arith.constant 1.000000e+00 : f32
    %47 = vector.broadcast %cst_16 : f32 to vector<1x128xf32>
    %48 = arith.addf %7, %47 : vector<1x128xf32>
    %cst_17 = arith.constant 1.000000e+00 : f32
    %49 = vector.broadcast %cst_17 : f32 to vector<1x128xf32>
    %50 = arith.subf %49, %8 : vector<1x128xf32>
    %51 = arith.mulf %50, %9 : vector<1x128xf32>
    %cst_18 = arith.constant 0.000000e+00 : f32
    %52 = vector.broadcast %cst_18 : f32 to vector<1x128xf32>
    %53 = arith.cmpf oge, %46, %52 : vector<1x128xf32>
    %cst_19 = arith.constant 1.500000e+01 : f32
    %54 = vector.broadcast %cst_19 : f32 to vector<1x128xf32>
    %55 = arith.cmpf ole, %46, %54 : vector<1x128xf32>
    %56 = arith.andi %53, %55 : vector<1x128xi1>
    %cst_20 = arith.constant 0.000000e+00 : f32
    %57 = vector.broadcast %cst_20 : f32 to vector<1x128xf32>
    %58 = arith.cmpf oge, %48, %57 : vector<1x128xf32>
    %59 = arith.andi %56, %58 : vector<1x128xi1>
    %cst_21 = arith.constant 1.500000e+01 : f32
    %60 = vector.broadcast %cst_21 : f32 to vector<1x128xf32>
    %61 = arith.cmpf ole, %48, %60 : vector<1x128xf32>
    %62 = arith.andi %59, %61 : vector<1x128xi1>
    %cst_22 = arith.constant 1.600000e+01 : f32
    %63 = vector.broadcast %cst_22 : f32 to vector<1x128xf32>
    %64 = arith.mulf %46, %63 : vector<1x128xf32>
    %65 = arith.addf %64, %48 : vector<1x128xf32>
    %cst_23 = arith.constant -1.000000e+00 : f32
    %66 = vector.broadcast %cst_23 : f32 to vector<1x128xf32>
    %67 = arith.select %62, %65, %66 : vector<1x128xi1>, vector<1x128xf32>
    %68 = arith.fptosi %67 : vector<1x128xf32> to vector<1x128xi32>
    %c0_i32_24 = arith.constant 0 : i32
    %69 = vector.broadcast %c0_i32_24 : i32 to vector<1x128xi32>
    %70 = arith.subi %68, %69 : vector<1x128xi32>
    %71 = vector.broadcast %70 : vector<1x128xi32> to vector<256x128xi32>
    %72 = arith.cmpi eq, %10, %71 : vector<256x128xi32>
    %73 = vector.shape_cast %51 : vector<1x128xf32> to vector<1x128xf32>
    %74 = vector.broadcast %73 : vector<1x128xf32> to vector<256x128xf32>
    %75 = arith.select %72, %74, %44 : vector<256x128xi1>, vector<256x128xf32>
    %cst_25 = arith.constant 1.000000e+00 : f32
    %76 = vector.broadcast %cst_25 : f32 to vector<1x128xf32>
    %77 = arith.addf %6, %76 : vector<1x128xf32>
    %cst_26 = arith.constant 0.000000e+00 : f32
    %78 = vector.broadcast %cst_26 : f32 to vector<1x128xf32>
    %79 = arith.addf %7, %78 : vector<1x128xf32>
    %cst_27 = arith.constant 1.000000e+00 : f32
    %80 = vector.broadcast %cst_27 : f32 to vector<1x128xf32>
    %81 = arith.subf %80, %9 : vector<1x128xf32>
    %82 = arith.mulf %8, %81 : vector<1x128xf32>
    %cst_28 = arith.constant 0.000000e+00 : f32
    %83 = vector.broadcast %cst_28 : f32 to vector<1x128xf32>
    %84 = arith.cmpf oge, %77, %83 : vector<1x128xf32>
    %cst_29 = arith.constant 1.500000e+01 : f32
    %85 = vector.broadcast %cst_29 : f32 to vector<1x128xf32>
    %86 = arith.cmpf ole, %77, %85 : vector<1x128xf32>
    %87 = arith.andi %84, %86 : vector<1x128xi1>
    %cst_30 = arith.constant 0.000000e+00 : f32
    %88 = vector.broadcast %cst_30 : f32 to vector<1x128xf32>
    %89 = arith.cmpf oge, %79, %88 : vector<1x128xf32>
    %90 = arith.andi %87, %89 : vector<1x128xi1>
    %cst_31 = arith.constant 1.500000e+01 : f32
    %91 = vector.broadcast %cst_31 : f32 to vector<1x128xf32>
    %92 = arith.cmpf ole, %79, %91 : vector<1x128xf32>
    %93 = arith.andi %90, %92 : vector<1x128xi1>
    %cst_32 = arith.constant 1.600000e+01 : f32
    %94 = vector.broadcast %cst_32 : f32 to vector<1x128xf32>
    %95 = arith.mulf %77, %94 : vector<1x128xf32>
    %96 = arith.addf %95, %79 : vector<1x128xf32>
    %cst_33 = arith.constant -1.000000e+00 : f32
    %97 = vector.broadcast %cst_33 : f32 to vector<1x128xf32>
    %98 = arith.select %93, %96, %97 : vector<1x128xi1>, vector<1x128xf32>
    %99 = arith.fptosi %98 : vector<1x128xf32> to vector<1x128xi32>
    %c0_i32_34 = arith.constant 0 : i32
    %100 = vector.broadcast %c0_i32_34 : i32 to vector<1x128xi32>
    %101 = arith.subi %99, %100 : vector<1x128xi32>
    %102 = vector.broadcast %101 : vector<1x128xi32> to vector<256x128xi32>
    %103 = arith.cmpi eq, %10, %102 : vector<256x128xi32>
    %104 = vector.shape_cast %82 : vector<1x128xf32> to vector<1x128xf32>
    %105 = vector.broadcast %104 : vector<1x128xf32> to vector<256x128xf32>
    %106 = arith.select %103, %105, %75 : vector<256x128xi1>, vector<256x128xf32>
    %cst_35 = arith.constant 1.000000e+00 : f32
    %107 = vector.broadcast %cst_35 : f32 to vector<1x128xf32>
    %108 = arith.addf %6, %107 : vector<1x128xf32>
    %cst_36 = arith.constant 1.000000e+00 : f32
    %109 = vector.broadcast %cst_36 : f32 to vector<1x128xf32>
    %110 = arith.addf %7, %109 : vector<1x128xf32>
    %111 = arith.mulf %8, %9 : vector<1x128xf32>
    %cst_37 = arith.constant 0.000000e+00 : f32
    %112 = vector.broadcast %cst_37 : f32 to vector<1x128xf32>
    %113 = arith.cmpf oge, %108, %112 : vector<1x128xf32>
    %cst_38 = arith.constant 1.500000e+01 : f32
    %114 = vector.broadcast %cst_38 : f32 to vector<1x128xf32>
    %115 = arith.cmpf ole, %108, %114 : vector<1x128xf32>
    %116 = arith.andi %113, %115 : vector<1x128xi1>
    %cst_39 = arith.constant 0.000000e+00 : f32
    %117 = vector.broadcast %cst_39 : f32 to vector<1x128xf32>
    %118 = arith.cmpf oge, %110, %117 : vector<1x128xf32>
    %119 = arith.andi %116, %118 : vector<1x128xi1>
    %cst_40 = arith.constant 1.500000e+01 : f32
    %120 = vector.broadcast %cst_40 : f32 to vector<1x128xf32>
    %121 = arith.cmpf ole, %110, %120 : vector<1x128xf32>
    %122 = arith.andi %119, %121 : vector<1x128xi1>
    %cst_41 = arith.constant 1.600000e+01 : f32
    %123 = vector.broadcast %cst_41 : f32 to vector<1x128xf32>
    %124 = arith.mulf %108, %123 : vector<1x128xf32>
    %125 = arith.addf %124, %110 : vector<1x128xf32>
    %cst_42 = arith.constant -1.000000e+00 : f32
    %126 = vector.broadcast %cst_42 : f32 to vector<1x128xf32>
    %127 = arith.select %122, %125, %126 : vector<1x128xi1>, vector<1x128xf32>
    %128 = arith.fptosi %127 : vector<1x128xf32> to vector<1x128xi32>
    %c0_i32_43 = arith.constant 0 : i32
    %129 = vector.broadcast %c0_i32_43 : i32 to vector<1x128xi32>
    %130 = arith.subi %128, %129 : vector<1x128xi32>
    %131 = vector.broadcast %130 : vector<1x128xi32> to vector<256x128xi32>
    %132 = arith.cmpi eq, %10, %131 : vector<256x128xi32>
    %133 = vector.shape_cast %111 : vector<1x128xf32> to vector<1x128xf32>
    %134 = vector.broadcast %133 : vector<1x128xf32> to vector<256x128xf32>
    %135 = arith.select %132, %134, %106 : vector<256x128xi1>, vector<256x128xf32>
    %cst_44 = arith.constant dense<0.000000e+00> : vector<4x128xf32>
    %136 = tpu.matmul %1, %135, %cst_44 {dimension_numbers = #tpu.dot_dimension_numbers<[1], [0], [0], [1], [0, 0, 1, 1], [], []>, precision = #tpu.contract_precision<fp32>} : vector<4x256xf32>, vector<256x128xf32>, vector<4x128xf32> -> vector<4x128xf32>
    %c0_45 = arith.constant 0 : index
    %c0_46 = arith.constant 0 : index
    %c0_47 = arith.constant 0 : index
    %137 = vector.load %arg5[%c0_45, %c0_46, %c0_47] : memref<1x4x128xf32, #tpu.memory_space<vmem>>, vector<1x4x128xf32>
    %138 = vector.shape_cast %137 : vector<1x4x128xf32> to vector<4x128xf32>
    %139 = vector.shape_cast %136 : vector<4x128xf32> to vector<1x4x128xf32>
    tpu.vector_store %arg5[%c0_45, %c0_46, %c0_47], %139 {strides = array<i32>} : memref<1x4x128xf32, #tpu.memory_space<vmem>>, vector<1x4x128xf32>,
    return
  }
  func.func @transform_0(%arg0: i32, %arg1: i32, %arg2: memref<2x2xi32, #tpu.memory_space<smem>>) -> (i32, i32, i32) {
    %c0_i32 = arith.constant 0 : i32
    %c0_i32_0 = arith.constant 0 : i32
    %c0_i32_1 = arith.constant 0 : i32
    return %arg0, %c0_i32, %c0_i32_0 : i32, i32, i32
  }
  func.func @transform_1(%arg0: i32, %arg1: i32, %arg2: memref<2x2xi32, #tpu.memory_space<smem>>) -> (i32, i32, i32) {
    %c0_i32 = arith.constant 0 : i32
    %c0_i32_0 = arith.constant 0 : i32
    return %arg0, %c0_i32, %arg1 : i32, i32, i32
  }
  func.func @transform_2(%arg0: i32, %arg1: i32, %arg2: memref<2x2xi32, #tpu.memory_space<smem>>) -> (i32, i32, i32) {
    %c0_i32 = arith.constant 0 : i32
    %c0_i32_0 = arith.constant 0 : i32
    return %arg0, %c0_i32, %arg1 : i32, i32, i32
  }
}

</mosaic_0001>

<bundles_post_ra>
// kernel: tpu_custom_call.1
= control target key start
LH: loop header
LB: loop body
LE: loop exit
PB: predicated region body
PF: predicated region fallthrough
CT: control target
= control target key end

     0   :  { %s2134_s12 = smov [#allocation3]   ;;  %s3584_s0 = inlined_call_operand.hbm [shape: s32[2,2], index: 0, kind: input, shape index: {}]   ;;  %s3585_s1 = inlined_call_operand.hbm [shape: f32[2,4,256], index: 1, kind: input, shape index: {}]   ;;  %s3586_s2 = inlined_call_operand.hbm [shape: f32[2,2,256], index: 2, kind: input, shape index: {}]   ;;  %s3587_s3 = inlined_call_operand.hbm [shape: f32[2,4,256], index: 3, kind: output, shape index: {}]  }
   0x1   :  { %3677 = sst [smem:[#allocation45_spill]] %s3585_s1 }
   0x2   :  { %3678 = sst [smem:[#allocation46_spill]] %s3587_s3 }
   0x3   :  { %9 = dma.hbm_to_smem %s3584_s0, 32, %s2134_s12, [#allocation2] }
   0x4   :  { %2076 = dma.done.wait [#allocation2], 32 }
   0x5   :  { %2077 = vsyncadd [#allocation2], 4294967264 }
   0x6   :  { %11 = sfence }
   0x7   :  { %12 = vsyncpa [#allocation5], 0 }
   0x8   :  { %14 = vsyncpa [#allocation5 + $0x1], 0 }
   0x9   :  { %15 = vsyncpa [#allocation8], 0 }
   0xa   :  { %17 = vsyncpa [#allocation8 + $0x1], 0 }
   0xb   :  { %18 = vsyncpa [#allocation6], 0 }
   0xc   :  { %20 = vsyncpa [#allocation6 + $0x1], 0  ;;  %s2162_s15 = smov 0   ;;  %s2164_s16 = smov 0  }
   0xd   :  { %s2166_s17 = smov 0   ;;  %s2168_s18 = smov 0  }
   0xe   :  { %s2170_s19 = smov 0   ;;  %s2172_s0 = smov 0  }
   0xf   :  { %s2174_s20 = smov 0   ;;  %s2176_s21 = smov 0  }
  0x10   :  { %s2178_s22 = smov 0   ;;  %s2180_s23 = smov 0  }
  0x11   :  { %s2182_s24 = smov 0  }
  0x12 LB: > { %3679 = sst [smem:[#allocation14_spill]] %s2092_s15  ;;  %s1594_s25 = sadd.s32 4294967295, %s2132_s24   ;;  %s2132_s24 = sphi %s2182_s24, %s26_s24   ;;  %s2128_s23 = sphi %s2180_s23, %s3811_s23   ;;  %s2124_s22 = sphi %s2178_s22, %s3810_s22   ;;  %s2120_s21 = sphi %s2176_s21, %s3809_s21   ;;  %s2116_s20 = sphi %s2174_s20, %s3808_s20   ;;  %s2112_s0 = sphi %s2172_s0, %s3807_s0   ;;  %s2108_s19 = sphi %s2170_s19, %s3806_s19   ;;  %s2104_s18 = sphi %s2168_s18, %s3805_s18   ;;  %s2100_s17 = sphi %s2166_s17, %s3804_s17   ;;  %s2096_s16 = sphi %s2164_s16, %s3803_s16   ;;  %s2092_s15 = sphi %s2162_s15, %s3802_s15  }
  0x13   : > { %p52_p0 = scmp.ne.s32.totalorder %s2112_s0, %s2108_s19  ;;  %p53_p1 = scmp.eq.s32.totalorder %s2132_s24, 0 }
  0x14   : > { %p58_p2 = scmp.ne.s32.totalorder %s2108_s19, %s2104_s18  ;;  %p2222_p3 = scmp.eq.s32.totalorder %s1594_s25, 0 }
  0x15   : > { %p54_p4 = por %p53_p1, %p52_p0  ;;  %p3588_p6 = scmp.lt.s32.totalorder %s2132_s24, 4 }
  0x16   : > { %p2230_p5 = por %p2222_p3, %p58_p2  ;;  %s138_s28 = sand.u32 1, %s2112_s0  }
  0x17   : > { %s1613_s29 = sshll.u32 %s2128_s23, 7  ;;  %s1598_s30 = sshll.u32 %s138_s28, 3 }
  0x18   : > { %s3682_s1 = sld [smem:[#allocation45_spill]]  ;;  %s142_s7 = scalar_lea.vmem [#allocation4], %s1598_s30 }
  0x19   : > { %s150_s8 = sshll.u32 %s142_s7, 4  ;;  %p2242_p7 = pnand %p3588_p6, %p54_p4  ;;  %s151_s8 = int_to_ptr.vmem [resolvable:$true] %s150_s8 }
  0x1a   : > { %p1604_p8 = scmp.ge.s32.totalorder %s2132_s24, 1  ;;  %p175_p9 = scmp.lt.s32.totalorder %s2132_s24, 5 }
  0x1b   : > { %s139_s10 = scalar_lea.sflag [#allocation5], %s138_s28  ;;  %p1952_p10 = pneg %p2242_p7 }
  0x1c   : > { %s1963_s11 = scalar_lea.vmem %s151_s8, 128  ;;  %s2135_s12 = smov [#allocation4]  }
  0x1d   : > { %p1964_p11 = scmp.ne.s32.totalorder %s151_s8, %s1963_s11  ;;  %s1968_s13 = sshll.u32 %s2135_s12, 4  ;;  %s1969_s13 = int_to_ptr.vmem [resolvable:$false] %s1968_s13 }
  0x1e   : > { %s148_s6 = scalar_lea.hbm %s3682_s1, %s1613_s29  ;;  %s1970_s14 = scalar_lea.vmem %s1969_s13, 256 }
  0x1f   : > { %p1966_p12 = pnand %p1964_p11, %p1952_p10  ;;  %p1971_p0 = scmp.lt.s32.totalorder %s151_s8, %s1969_s13 }
  0x20   : > { %p1972_p2 = scmp.lt.s32.totalorder %s1970_s14, %s1963_s11 }
  0x21   : > { %p1967_p13 = pneg %p1966_p12 }
  0x22   : > { %p1973_p4 = por %p1972_p2, %p1971_p0 }
  0x24   : > { %p1974_p6 = pnand %p1973_p4, %p1967_p13 }
  0x26   : > { %1977 = shalt.err (!%p1974_p6)
}
  0x27   : > { %1841 = dma.hbm_to_vmem [thread:$0]  (!%p2242_p7), %s148_s6, 128, %s151_s8, %s139_s10  }
  0x28   : > { %p2256_p6 = pnand %p1604_p8, %p175_p9  ;;  %s45_s28 = sadd.s32 1, %s2112_s0 }
  0x29   : > { %s1595_s29 = sadd.s32 4294967294, %s2132_s24   ;;  %s35_s30 = sadd.s32 1, %s2124_s22 }
  0x2a   : > { %p36_p10 = scmp.ge.s32.totalorder %s35_s30, 2  ;;  %s38_s4 = sadd.s32 1, %s2128_s23 }
  0x2b   : > { %s73_s5 = sadd.s32 1, %s2100_s17  ;;  %p86_p11 = scmp.ne.s32.totalorder %s2096_s16, %s2092_s15 }
  0x2c   : > { %s3813_s30 = smov (%p36_p10, %s35_s30), 0  ;;  %s3815_s4 = smov (!%p36_p10, %s38_s4), %s2128_s23 }
  0x2d   : > { %3685 = sst [smem:[#allocation15_spill]] %s3813_s30  ;;  %s69_s6 = ssub.s32 %s2124_s22, %s3813_s30 }
  0x2e   : > { %p80_p7 = scmp.ne.s32.totalorder %s2100_s17, %s2096_s16  ;;  %p40_p8 = scmp.ge.s32.totalorder %s3815_s4, 2 }
  0x2f   : > { %p2276_p9 = por %p86_p11, %p2222_p3  ;;  %p112_p12 = scmp.eq.s32.totalorder %s1594_s25, 3 }
  0x30   : > { %p118_p13 = scmp.eq.s32.totalorder %s1595_s29, 3  ;;  %s3817_s4 = smov (%p40_p8, %s3815_s4), 0 }
  0x31   : > { %3687 = sst [smem:[#allocation16_spill]] %s3817_s4  ;;  %p2284_p0 = por %p112_p12, %p80_p7 }
  0x32   : > { %p2288_p2 = por %p118_p13, %p86_p11  ;;  %s42_s26 = ssub.s32 %s2128_s23, %s3817_s4 }
  0x33   : > { %s3688_s8 = scalar_select %p2284_p0, 1, 0 }
  0x34   : > { %s3690_s9 = scalar_select %p2288_p2, 1, 0 }
  0x35   : > { %3689 = sst [smem:[#allocation17_spill]] %s3688_s8  ;;  %p2296_p3 = por %p80_p7, %p53_p1 }
  0x36   : > { %3691 = sst [smem:[#allocation18_spill]] %s3690_s9  ;;  %p43_p4 = scmp.eq.s32.totalorder %s42_s26, 0 }
  0x37   : > { %s70_s25 = sor.u32 %s69_s6, %s42_s26  ;;  %s157_s11 = sand.u32 1, %s2100_s17  }
  0x38   : > { %p71_p10 = scmp.eq.s32.totalorder %s70_s25, 0  ;;  %s1601_s14 = sshll.u32 %s157_s11, 1 }
  0x39   : > { %s2302_s12 = scalar_select %p43_p4, %s2112_s0, %s45_s28  }
  0x3a   : > { %s2305_s13 = scalar_select %p71_p10, %s2100_s17, %s73_s5  }
  0x3b   : > { %s1602_s29 = sshll.u32 %s2128_s23, 1  ;;  %s161_s4 = scalar_lea.vmem [#allocation7], %s1601_s14 }
  0x3c   : > { %s166_s1 = sadd.s32 %s2124_s22, %s1602_s29  ;;  %s170_s9 = sshll.u32 %s161_s4, 4  ;;  %s171_s9 = int_to_ptr.vmem [resolvable:$true] %s170_s9 }
  0x3d   : > { %s1603_s30 = sshll.u32 %s166_s1, 5  ;;  %p3693_p1 = scmp.lt.s32.totalorder %s2132_s24, 4 }
  0x3e   : > { %s168_s8 = scalar_lea.hbm %s3586_s2, %s1603_s30  ;;  %s158_s28 = scalar_lea.sflag [#allocation8], %s157_s11 }
  0x3f   : > { %p2316_p11 = pnand %p3693_p1, %p2296_p3  ;;  %s1991_s5 = scalar_lea.vmem %s171_s9, 32 }
  0x40   : > { %p1992_p8 = scmp.ne.s32.totalorder %s171_s9, %s1991_s5  ;;  %s2136_s1 = smov [#allocation7]  }
  0x41   : > { %p1980_p7 = pneg %p2316_p11  ;;  %s1996_s4 = sshll.u32 %s2136_s1, 4  ;;  %s1997_s4 = int_to_ptr.vmem [resolvable:$false] %s1996_s4 }
  0x42   : > { %s1998_s3 = scalar_lea.vmem %s1997_s4, 64  ;;  %p1999_p4 = scmp.lt.s32.totalorder %s171_s9, %s1997_s4 }
  0x43   : > { %p1994_p12 = pnand %p1992_p8, %p1980_p7  ;;  %p2000_p10 = scmp.lt.s32.totalorder %s1998_s3, %s1991_s5 }
  0x45   : > { %p1995_p13 = pneg %p1994_p12  ;;  %p2001_p2 = por %p2000_p10, %p1999_p4 }
  0x47   : > { %p2002_p0 = pnand %p2001_p2, %p1995_p13 }
  0x49   : > { %2005 = shalt.err (!%p2002_p0)
}
  0x4a   : > { %1844 = dma.hbm_to_vmem [thread:$0]  (!%p2316_p11), %s168_s8, 32, %s171_s9, %s158_s28  }
  0x4b   : > { %179 = sbr.rel (%p2256_p6) target bundleno = 510 (0x1fe), region = 28 }
  0x50   : > { %s181_s15 = sand.u32 1, %s2108_s19  }
  0x51   : > { %s2327_s30 = sshll.u32 %s181_s15, 3  ;;  %s182_s26 = scalar_lea.sflag [#allocation5], %s181_s15 }
  0x52   : > { %s185_s10 = scalar_lea.vmem [#allocation4], %s2327_s30 }
  0x53   : > { %2079 = dma.done.wait (%p2230_p5), %s182_s26, 128  }
  0x54   : > { %2081 = vsyncadd (%p2230_p5), %s182_s26, 4294967168  ;;  %s2335_s25 = sand.u32 1, %s2096_s16  }
  0x55   : > { %s1606_s18 = sshll.u32 %s2335_s25, 1  ;;  %s191_s8 = scalar_lea.sflag [#allocation8], %s2335_s25 }
  0x56   : > { %s194_s9 = scalar_lea.vmem [#allocation7], %s1606_s18 }
  0x57   : > { %2083 = dma.done.wait (%p2276_p9), %s191_s8, 32  }
  0x58   : > { %2085 = vsyncadd (%p2276_p9), %s191_s8, 4294967264  ;;  %v224_v0 = vlaneseq  ;;  %v221_v14 = vld [vmem:[%s194_s9] sm:$0x3]  ;;  %v2137_v29 = vmov 0   ;;  %s1607_s27 = sshll.u32 %s2335_s25, 2  ;;  %s1609_s7 = sshll.u32 %s2120_s21, 1 }
  0x59   : > { %v222_v19 = vfloor.f32 %v221_v14  ;;  %s1482_s11 = sadd.s32 %s2116_s20, %s1609_s7  ;;  %s3794_s14 = sld [smem:[#allocation17_spill]] }
  0x5a   : > { %v2343_v1 = vshrl.u32 %v224_v0, 7  ;;  %s1610_s29 = sshll.u32 %s1482_s11, 6  ;;  %s219_s6 = scalar_lea.vmem [#allocation9], %s1607_s27 }
  0x5b   : > { %v223_v27 = vsub.f32 %v221_v14, %v222_v19  ;;  %vm263_vm0 = vcmp.ge.f32.partialorder %v222_v19, 0.0  ;;  %vm264_vm1 = vcmp.le.f32.partialorder %v222_v19, 15.0  ;;  %v274_v28 = vmul.f32 16.0, %v222_v19  ;;  %s1486_s28 = sshll.u32 %s219_s6, 4  ;;  %s3795_s4 = sld [smem:[#allocation46_spill]]  ;;  %s1487_s28 = int_to_ptr.vmem [resolvable:$true] %s1486_s28 }
  0x5c   : > { %v2346_v2 = vsub.s32 0, %v2343_v1  ;;  %v2349_v3 = vadd.s32 248, %v2343_v1  ;;  %v2352_v4 = vadd.s32 120, %v2343_v1  ;;  %v2355_v5 = vadd.s32 240, %v2343_v1  ;;  %vm2414_vm2 = vmand %vm263_vm0, %vm264_vm1  ;;  %s1471_s3 = scalar_lea.sflag [#allocation6], %s2335_s25  ;;  %s2006_s15 = scalar_lea.vmem %s1487_s28, 64 }
  0x5d   : > { %v2358_v6 = vadd.s32 112, %v2343_v1  ;;  %v2361_v7 = vadd.s32 232, %v2343_v1  ;;  %v2364_v8 = vadd.s32 104, %v2343_v1  ;;  %v2367_v9 = vadd.s32 224, %v2343_v1  ;;  %p2007_p5 = scmp.ne.s32.totalorder %s1487_s28, %s2006_s15  ;;  %s2138_s20 = smov [#allocation9]  }
  0x5e   : > { %v2370_v10 = vadd.s32 96, %v2343_v1  ;;  %v2373_v11 = vadd.s32 216, %v2343_v1  ;;  %v2376_v12 = vadd.s32 88, %v2343_v1  ;;  %v2379_v13 = vadd.s32 208, %v2343_v1  ;;  %s2010_s30 = sshll.u32 %s2138_s20, 4  ;;  %s2011_s30 = int_to_ptr.vmem [resolvable:$false] %s2010_s30 }
  0x5f   : > { %v2382_v15 = vadd.s32 80, %v2343_v1  ;;  %v2385_v16 = vadd.s32 200, %v2343_v1  ;;  %v2388_v17 = vadd.s32 72, %v2343_v1  ;;  %v2391_v18 = vadd.s32 192, %v2343_v1  ;;  %p3796_p6 = scmp.ne.s32.totalorder %s3794_s14, 0  ;;  %s2012_s26 = scalar_lea.vmem %s2011_s30, 128 }
  0x60   : > { %v2394_v20 = vadd.s32 64, %v2343_v1  ;;  %v2397_v21 = vadd.s32 184, %v2343_v1  ;;  %v2400_v22 = vadd.s32 56, %v2343_v1  ;;  %v2403_v23 = vadd.s32 176, %v2343_v1  ;;  %p2013_p2 = scmp.lt.s32.totalorder %s1487_s28, %s2011_s30  ;;  %p2014_p3 = scmp.lt.s32.totalorder %s2012_s26, %s2006_s15 }
  0x61   : > { %v2406_v24 = vadd.s32 48, %v2343_v1  ;;  %v2409_v25 = vadd.s32 168, %v2343_v1  ;;  %v2412_v26 = vadd.s32 40, %v2343_v1  ;;  %v266_v30 = vsel %vm263_vm0, 1, %v2137_v29  ;;  %s1484_s21 = scalar_lea.hbm %s3795_s4, %s1610_s29  ;;  %p2008_p9 = pnand %p2007_p5, %p3796_p6 }
  0x62   : > { %v270_v31 = vsel %vm264_vm1, 1, %v2137_v29  ;;  %v276_v32 = vrot.slane %v222_v19, 1  ;;  %v353_v33 = vadd.f32 1.0, %v222_v19  ;;  %v258_v34 = vsub.f32 1.0, %v223_v27  ;;  %p2015_p1 = por %p2014_p3, %p2013_p2 }
  0x63   : > { %v267_v36 = vrot.slane %v266_v30, 1  ;;  %v271_v37 = vrot.slane %v270_v31, 1  ;;  %v355_v38 = vrot.slane %v223_v27, 1  ;;  %v2479_v31 = vadd.s32 152, %v2343_v1  ;;  %p2009_p0 = pneg %p2008_p9 }
  0x64   : > { %v278_v39 = vadd.f32 %v276_v32, %v274_v28  ;;  %vm358_vm3 = vcmp.ge.f32.partialorder %v353_v33, 0.0  ;;  %vm363_vm4 = vcmp.le.f32.partialorder %v353_v33, 15.0  ;;  %v369_v40 = vrot.slane %v353_v33, 1 }
  0x65   : > { %v260_v41 = vrot.slane %v258_v34, 1  ;;  %vm2418_vm5 = vcmp.ne.s32.totalorder %v267_v36, 0  ;;  %vm2422_vm6 = vcmp.ne.s32.totalorder %v271_v37, 0  ;;  %v357_v44 = vmul.f32 %v355_v38, %v258_v34  ;;  %vm2426_vm7 = vmand %vm358_vm3, %vm363_vm4  ;;  %p2016_p11 = pnand %p2015_p1, %p2009_p0 }
  0x66   : > { %vm269_vm8 = vmand %vm2414_vm2, %vm2418_vm5  ;;  %v359_v46 = vsel %vm358_vm3, 1, %v2137_v29  ;;  %v364_v47 = vsel %vm363_vm4, 1, %v2137_v29  ;;  %v371_v48 = vadd.f32 %v369_v40, %v274_v28  ;;  %v450_v49 = vmul.f32 16.0, %v353_v33 }
  0x67   : > { %v262_v50 = vmul.f32 %v260_v41, %v258_v34  ;;  %vm273_vm9 = vmand %vm269_vm8, %vm2422_vm6  ;;  %v360_v51 = vrot.slane %v359_v46, 1  ;;  %v365_v52 = vrot.slane %v364_v47, 1  ;;  %v2437_v53 = vrot.slane %v357_v44, %v2346_v2 }
  0x68   : > { %v279_v54 = vsel %vm273_vm9, %v278_v39, -1.0  ;;  %v446_v55 = vmul.f32 %v260_v41, %v223_v27  ;;  %vm448_vm10 = vmand %vm2426_vm7, %vm2418_vm5  ;;  %v451_v56 = vadd.f32 %v450_v49, %v276_v32  ;;  %v526_v57 = vmul.f32 %v355_v38, %v223_v27 }
  0x69   : > { %v1824_v58 = vtrunc.f32 %v279_v54  ;;  %v2444_v59 = vrot.slane %v262_v50, %v2346_v2  ;;  %vm2446_vm11 = vcmp.ne.s32.totalorder %v360_v51, 0  ;;  %vm2450_vm12 = vcmp.ne.s32.totalorder %v365_v52, 0  ;;  %vm449_vm13 = vmand %vm448_vm10, %vm2422_vm6 }
  0x6a   : > { %vm362_vm14 = vmand %vm2414_vm2, %vm2446_vm11  ;;  %v452_v62 = vsel %vm449_vm13, %v451_v56, -1.0  ;;  %v2461_v63 = vrot.slane %v446_v55, %v2346_v2  ;;  %v529_v0 = vadd.f32 %v450_v49, %v369_v40  ;;  %v2464_v14 = vrot.slane %v526_v57, %v2346_v2 }
  0x6b   : > { %v1825_v19 = vcvt.f32.s32 %v1824_v58  ;;  %vm367_vm15 = vmand %vm362_vm14, %vm2450_vm12  ;;  %v1828_v27 = vtrunc.f32 %v452_v62  ;;  %v2469_v28 = vadd.s32 160, %v2343_v1  ;;  %v2472_v29 = vadd.s32 32, %v2343_v1 }
  0x6c   : > { %v372_v30 = vsel %vm367_vm15, %v371_v48, -1.0  ;;  %vm527_vm0 = vmand %vm2426_vm7, %vm2446_vm11  ;;  %v2482_v32 = vadd.s32 24, %v2343_v1  ;;  %v2485_v33 = vadd.s32 144, %v2343_v1  ;;  %v2493_v37 = vadd.s32 16, %v2343_v1 }
  0x6d   : > { %v2488_v34 = vrot.slane %v1825_v19, %v2346_v2  ;;  %v1826_v35 = vtrunc.f32 %v372_v30  ;;  %v1829_v36 = vcvt.f32.s32 %v1828_v27  ;;  %vm528_vm1 = vmand %vm527_vm0, %vm2450_vm12  ;;  %v2496_v39 = vadd.s32 136, %v2343_v1 }
  0x6e   : > { %v530_v38 = vsel %vm528_vm1, %v529_v0, -1.0  ;;  %v2499_v40 = vadd.s32 8, %v2343_v1  ;;  %v2502_v41 = vadd.s32 128, %v2343_v1 }
  0x6f   : > { %v1827_v42 = vcvt.f32.s32 %v1826_v35  ;;  %v2505_v43 = vrot.slane %v1829_v36, %v2346_v2  ;;  %v1830_v44 = vtrunc.f32 %v530_v38  ;;  %vm316_vm2 = vcmp.eq.s32.totalorder %v2349_v3, %v2488_v34 }
  0x70   : > { %v352_v45 = vsel %vm316_vm2, %v2444_v59, 0.0  ;;  %vm300_vm3 = vcmp.eq.s32.totalorder %v2352_v4, %v2488_v34  ;;  %vm315_vm4 = vcmp.eq.s32.totalorder %v2355_v5, %v2488_v34  ;;  %vm299_vm5 = vcmp.eq.s32.totalorder %v2358_v6, %v2488_v34 }
  0x71   : > { %v2517_v46 = vrot.slane %v1827_v42, %v2346_v2  ;;  %v1831_v47 = vcvt.f32.s32 %v1830_v44  ;;  %vm489_vm6 = vcmp.eq.s32.totalorder %v2349_v3, %v2505_v43  ;;  %v336_v48 = vsel %vm300_vm3, %v2444_v59, 0.0 }
  0x72   : > { %vm473_vm7 = vcmp.eq.s32.totalorder %v2352_v4, %v2505_v43  ;;  %v351_v49 = vsel %vm315_vm4, %v2444_v59, 0.0  ;;  %vm488_vm8 = vcmp.eq.s32.totalorder %v2355_v5, %v2505_v43  ;;  %v335_v50 = vsel %vm299_vm5, %v2444_v59, 0.0 }
  0x73   : > { %v2529_v51 = vrot.slane %v1831_v47, %v2346_v2  ;;  %vm409_vm9 = vcmp.eq.s32.totalorder %v2349_v3, %v2517_v46  ;;  %vm393_vm10 = vcmp.eq.s32.totalorder %v2352_v4, %v2517_v46  ;;  %vm408_vm11 = vcmp.eq.s32.totalorder %v2355_v5, %v2517_v46 }
  0x74   : > { %v445_v52 = vsel %vm409_vm9, %v2437_v53, %v352_v45  ;;  %v429_v54 = vsel %vm393_vm10, %v2437_v53, %v336_v48  ;;  %v444_v55 = vsel %vm408_vm11, %v2437_v53, %v351_v49  ;;  %vm392_vm12 = vcmp.eq.s32.totalorder %v2358_v6, %v2517_v46 }
  0x75   : > { %v525_v2 = vsel %vm489_vm6, %v2461_v63, %v445_v52  ;;  %vm567_vm13 = vcmp.eq.s32.totalorder %v2349_v3, %v2529_v51  ;;  %v509_v56 = vsel %vm473_vm7, %v2461_v63, %v429_v54  ;;  %vm551_vm14 = vcmp.eq.s32.totalorder %v2352_v4, %v2529_v51 }
  0x76   : > { %v603_v57 = vsel %vm567_vm13, %v2464_v14, %v525_v2  ;;  %v2550_v58 = vsel %vm551_vm14, %v2464_v14, %v509_v56  ;;  %v524_v60 = vsel %vm488_vm8, %v2461_v63, %v444_v55  ;;  %vm566_vm15 = vcmp.eq.s32.totalorder %v2355_v5, %v2529_v51 }
  0x77   : > { %v2558_v61 = vand.u32 4294901760, %v603_v57  ;;  %v2561_v3 = vand.u32 4294901760, %v2550_v58  ;;  %v2564_v4 = vsel %vm566_vm15, %v2464_v14, %v524_v60  ;;  %v428_v62 = vsel %vm392_vm12, %v2437_v53, %v335_v50 }
  0x78   : > { %v2568_v0 = vand.u32 4294901760, %v2564_v4  ;;  %vm472_vm0 = vcmp.eq.s32.totalorder %v2358_v6, %v2505_v43  ;;  %vm550_vm1 = vcmp.eq.s32.totalorder %v2358_v6, %v2529_v51  ;;  %vm314_vm2 = vcmp.eq.s32.totalorder %v2361_v7, %v2488_v34 }
  0x79   : > { %1614 = vmatprep.subr.mxu0 %v2558_v61  ;;  %v508_v5 = vsel %vm472_vm0, %v2461_v63, %v428_v62  ;;  %v350_v19 = vsel %vm314_vm2, %v2444_v59, 0.0  ;;  %vm407_vm3 = vcmp.eq.s32.totalorder %v2361_v7, %v2517_v46  ;;  %vm487_vm4 = vcmp.eq.s32.totalorder %v2361_v7, %v2505_v43 }
  0x7a   : > { %1615 = vmatpush3.msra.mxu0 %v2561_v3  ;;  %v2585_v27 = vsel %vm550_vm1, %v2464_v14, %v508_v5  ;;  %v443_v6 = vsel %vm407_vm3, %v2437_v53, %v350_v19  ;;  %vm565_vm5 = vcmp.eq.s32.totalorder %v2361_v7, %v2529_v51  ;;  %vm298_vm6 = vcmp.eq.s32.totalorder %v2364_v8, %v2488_v34 }
  0x7b   : > { %1616 = vmatprep.subr.mxu0 %v2568_v0  ;;  %v2594_v30 = vand.u32 4294901760, %v2585_v27  ;;  %v523_v35 = vsel %vm487_vm4, %v2461_v63, %v443_v6  ;;  %v334_v36 = vsel %vm298_vm6, %v2444_v59, 0.0  ;;  %vm391_vm7 = vcmp.eq.s32.totalorder %v2364_v8, %v2517_v46 }
  0x7c   : > { %v2601_v38 = vsel %vm565_vm5, %v2464_v14, %v523_v35  ;;  %v427_v7 = vsel %vm391_vm7, %v2437_v53, %v334_v36  ;;  %vm471_vm8 = vcmp.eq.s32.totalorder %v2364_v8, %v2505_v43  ;;  %vm549_vm9 = vcmp.eq.s32.totalorder %v2364_v8, %v2529_v51 }
  0x7d   : > { %1617 = vmatpush3.msra.mxu0 %v2594_v30  ;;  %v2610_v42 = vand.u32 4294901760, %v2601_v38  ;;  %v507_v44 = vsel %vm471_vm8, %v2461_v63, %v427_v7  ;;  %vm313_vm10 = vcmp.eq.s32.totalorder %v2367_v9, %v2488_v34  ;;  %vm406_vm11 = vcmp.eq.s32.totalorder %v2367_v9, %v2517_v46 }
  0x7e   : > { %v2618_v45 = vsel %vm549_vm9, %v2464_v14, %v507_v44  ;;  %v349_v47 = vsel %vm313_vm10, %v2444_v59, 0.0  ;;  %vm486_vm12 = vcmp.eq.s32.totalorder %v2367_v9, %v2505_v43  ;;  %vm564_vm13 = vcmp.eq.s32.totalorder %v2367_v9, %v2529_v51 }
  0x7f   : > { %1618 = vmatprep.subr.mxu0 %v2610_v42  ;;  %v2627_v8 = vand.u32 4294901760, %v2618_v45  ;;  %v442_v48 = vsel %vm406_vm11, %v2437_v53, %v349_v47  ;;  %vm297_vm14 = vcmp.eq.s32.totalorder %v2370_v10, %v2488_v34  ;;  %vm390_vm15 = vcmp.eq.s32.totalorder %v2370_v10, %v2517_v46 }
  0x80   : > { %v522_v49 = vsel %vm486_vm12, %v2461_v63, %v442_v48  ;;  %v333_v50 = vsel %vm297_vm14, %v2444_v59, 0.0  ;;  %vm470_vm0 = vcmp.eq.s32.totalorder %v2370_v10, %v2505_v43  ;;  %vm548_vm1 = vcmp.eq.s32.totalorder %v2370_v10, %v2529_v51 }
  0x81   : > { %1619 = vmatpush3.msra.mxu0 %v2627_v8  ;;  %v2642_v9 = vsel %vm564_vm13, %v2464_v14, %v522_v49  ;;  %v426_v52 = vsel %vm390_vm15, %v2437_v53, %v333_v50  ;;  %vm312_vm2 = vcmp.eq.s32.totalorder %v2373_v11, %v2488_v34  ;;  %vm405_vm3 = vcmp.eq.s32.totalorder %v2373_v11, %v2517_v46 }
  0x82   : > { %v2650_v54 = vand.u32 4294901760, %v2642_v9  ;;  %v506_v55 = vsel %vm470_vm0, %v2461_v63, %v426_v52  ;;  %v348_v10 = vsel %vm312_vm2, %v2444_v59, 0.0  ;;  %vm485_vm4 = vcmp.eq.s32.totalorder %v2373_v11, %v2505_v43 }
  0x83   : > { %v2657_v2 = vsel %vm548_vm1, %v2464_v14, %v506_v55  ;;  %v441_v56 = vsel %vm405_vm3, %v2437_v53, %v348_v10  ;;  %vm563_vm5 = vcmp.eq.s32.totalorder %v2373_v11, %v2529_v51  ;;  %v2663_v60 = vsub.f32 %v603_v57, %v2558_v61 }
  0x84   : > { %1620 = vmatprep.subr.mxu0 %v2650_v54  ;;  %v2667_v62 = vand.u32 4294901760, %v2657_v2  ;;  %v521_v5 = vsel %vm485_vm4, %v2461_v63, %v441_v56  ;;  %vm296_vm6 = vcmp.eq.s32.totalorder %v2376_v12, %v2488_v34  ;;  %vm389_vm7 = vcmp.eq.s32.totalorder %v2376_v12, %v2517_v46 }
  0x85   : > { %3707 = vst [vmem:[#allocation19_spill] sm:$0xff] %v2663_v60  ;;  %v2675_v19 = vsel %vm563_vm5, %v2464_v14, %v521_v5  ;;  %v3603_v11 = vand.u32 4294901760, %v2663_v60  ;;  %v332_v57 = vsel %vm296_vm6, %v2444_v59, 0.0  ;;  %vm469_vm8 = vcmp.eq.s32.totalorder %v2376_v12, %v2505_v43 }
  0x86   : > { %1621 = vmatpush3.msra.mxu0 %v2667_v62  ;;  %v2683_v6 = vand.u32 4294901760, %v2675_v19  ;;  %v425_v35 = vsel %vm389_vm7, %v2437_v53, %v332_v57  ;;  %vm547_vm9 = vcmp.eq.s32.totalorder %v2376_v12, %v2529_v51  ;;  %v2690_v36 = vsub.f32 %v2550_v58, %v2561_v3 }
  0x87   : > { %v835_v7 = vsub.f32 %v2663_v60, %v3603_v11  ;;  %v505_v44 = vsel %vm469_vm8, %v2461_v63, %v425_v35  ;;  %vm311_vm10 = vcmp.eq.s32.totalorder %v2379_v13, %v2488_v34  ;;  %vm404_vm11 = vcmp.eq.s32.totalorder %v2379_v13, %v2517_v46 }
  0x88   : > { %3708 = vst [vmem:[#allocation20_spill] sm:$0xff] %v2683_v6  ;;  %1622 = vmatprep.subr.mxu0 %v2683_v6  ;;  %v2702_v12 = vsel %vm547_vm9, %v2464_v14, %v505_v44  ;;  %v3601_v58 = vand.u32 4294901760, %v2690_v36  ;;  %v347_v47 = vsel %vm311_vm10, %v2444_v59, 0.0  ;;  %vm484_vm12 = vcmp.eq.s32.totalorder %v2379_v13, %v2505_v43 }
  0x89   : > { %v836_v48 = vand.u32 4294901760, %v835_v7  ;;  %v2709_v49 = vand.u32 4294901760, %v2702_v12  ;;  %v440_v50 = vsel %vm404_vm11, %v2437_v53, %v347_v47  ;;  %vm562_vm13 = vcmp.eq.s32.totalorder %v2379_v13, %v2529_v51 }
  0x8a   : > { %v723_v52 = vsub.f32 %v2690_v36, %v3601_v58  ;;  %v520_v55 = vsel %vm484_vm12, %v2461_v63, %v440_v50  ;;  %v2720_v10 = vsub.f32 %v2564_v4, %v2568_v0  ;;  %vm295_vm14 = vcmp.eq.s32.totalorder %v2382_v15, %v2488_v34 }
  0x8b   : > { %3709 = vst [vmem:[#allocation21_spill] sm:$0xff] %v2709_v49  ;;  %1649 = vmatprep.subr.mxu1 %v836_v48  ;;  %1623 = vmatpush3.msra.mxu0 %v2709_v49  ;;  %v2726_v56 = vsel %vm562_vm13, %v2464_v14, %v520_v55  ;;  %v331_v13 = vsel %vm295_vm14, %v2444_v59, 0.0  ;;  %vm388_vm15 = vcmp.eq.s32.totalorder %v2382_v15, %v2517_v46 }
  0x8c   : > { %vm468_vm0 = vcmp.eq.s32.totalorder %v2382_v15, %v2505_v43  ;;  %v724_v5 = vand.u32 4294901760, %v723_v52  ;;  %v2734_v4 = vand.u32 4294901760, %v2726_v56  ;;  %v3599_v57 = vand.u32 4294901760, %v2720_v10 }
  0x8d   : > { %v424_v35 = vsel %vm388_vm15, %v2437_v53, %v331_v13  ;;  %vm546_vm1 = vcmp.eq.s32.totalorder %v2382_v15, %v2529_v51  ;;  %v2743_v44 = vsub.f32 %v2585_v27, %v2594_v30  ;;  %vm310_vm2 = vcmp.eq.s32.totalorder %v2385_v16, %v2488_v34 }
  0x8e   : > { %3710 = vst [vmem:[#allocation22_spill] sm:$0xff] %v2734_v4  ;;  %v504_v7 = vsel %vm468_vm0, %v2461_v63, %v424_v35  ;;  %1650 = vmatpush3.msra.mxu1 %v724_v5  ;;  %1624 = vmatprep.subr.mxu0 %v2734_v4  ;;  %v842_v47 = vsub.f32 %v2720_v10, %v3599_v57  ;;  %v346_v50 = vsel %vm310_vm2, %v2444_v59, 0.0 }
  0x8f   : > { %v2752_v48 = vsel %vm546_vm1, %v2464_v14, %v504_v7  ;;  %vm403_vm3 = vcmp.eq.s32.totalorder %v2385_v16, %v2517_v46  ;;  %v3597_v27 = vand.u32 4294901760, %v2743_v44  ;;  %vm483_vm4 = vcmp.eq.s32.totalorder %v2385_v16, %v2505_v43 }
  0x90   : > { %v2758_v15 = vand.u32 4294901760, %v2752_v48  ;;  %v439_v52 = vsel %vm403_vm3, %v2437_v53, %v346_v50  ;;  %v843_v55 = vand.u32 4294901760, %v842_v47  ;;  %vm561_vm5 = vcmp.eq.s32.totalorder %v2385_v16, %v2529_v51 }
  0x91   : > { %v519_v13 = vsel %vm483_vm4, %v2461_v63, %v439_v52  ;;  %v2769_v5 = vsub.f32 %v2601_v38, %v2610_v42  ;;  %v730_v35 = vsub.f32 %v2743_v44, %v3597_v27  ;;  %vm294_vm6 = vcmp.eq.s32.totalorder %v2388_v17, %v2488_v34 }
  0x92   : > { %3711 = vst [vmem:[#allocation23_spill] sm:$0xff] %v2758_v15  ;;  %1625 = vmatpush3.msra.mxu0 %v2758_v15  ;;  %v2776_v7 = vsel %vm561_vm5, %v2464_v14, %v519_v13  ;;  %vm387_vm7 = vcmp.eq.s32.totalorder %v2388_v17, %v2517_v46  ;;  %1651 = vmatprep.subr.mxu1 %v843_v55  ;;  %v330_v47 = vsel %vm294_vm6, %v2444_v59, 0.0 }
  0x93   : > { %v2783_v16 = vand.u32 4294901760, %v2776_v7  ;;  %v3598_v38 = vand.u32 4294901760, %v2769_v5  ;;  %vm467_vm8 = vcmp.eq.s32.totalorder %v2388_v17, %v2505_v43  ;;  %v731_v50 = vand.u32 4294901760, %v730_v35 }
  0x94   : > { %v423_v52 = vsel %vm387_vm7, %v2437_v53, %v330_v47  ;;  %vm545_vm9 = vcmp.eq.s32.totalorder %v2388_v17, %v2529_v51  ;;  %v2794_v13 = vsub.f32 %v2618_v45, %v2627_v8  ;;  %vm309_vm10 = vcmp.eq.s32.totalorder %v2391_v18, %v2488_v34 }
  0x95   : > { %3712 = vst [vmem:[#allocation24_spill] sm:$0xff] %v2783_v16  ;;  %1626 = vmatprep.subr.mxu0 %v2783_v16  ;;  %v849_v55 = vsub.f32 %v2769_v5, %v3598_v38  ;;  %v503_v27 = vsel %vm467_vm8, %v2461_v63, %v423_v52  ;;  %vm402_vm11 = vcmp.eq.s32.totalorder %v2391_v18, %v2517_v46  ;;  %v345_v35 = vsel %vm309_vm10, %v2444_v59, 0.0 }
  0x96   : > { %1652 = vmatpush3.msra.mxu1 %v731_v50  ;;  %v2806_v17 = vsel %vm545_vm9, %v2464_v14, %v503_v27  ;;  %v3600_v45 = vand.u32 4294901760, %v2794_v13  ;;  %vm482_vm12 = vcmp.eq.s32.totalorder %v2391_v18, %v2505_v43  ;;  %v438_v38 = vsel %vm402_vm11, %v2437_v53, %v345_v35 }
  0x97   : > { %v850_v47 = vand.u32 4294901760, %v849_v55  ;;  %v2813_v52 = vand.u32 4294901760, %v2806_v17  ;;  %vm560_vm13 = vcmp.eq.s32.totalorder %v2391_v18, %v2529_v51  ;;  %v518_v50 = vsel %vm482_vm12, %v2461_v63, %v438_v38 }
  0x98   : > { %v737_v27 = vsub.f32 %v2794_v13, %v3600_v45  ;;  %v2824_v57 = vsub.f32 %v2642_v9, %v2650_v54  ;;  %vm293_vm14 = vcmp.eq.s32.totalorder %v2394_v20, %v2488_v34  ;;  %v2830_v55 = vsel %vm560_vm13, %v2464_v14, %v518_v50 }
  0x99   : > { %3713 = vst [vmem:[#allocation25_spill] sm:$0xff] %v2813_v52  ;;  %1653 = vmatprep.subr.mxu1 %v850_v47  ;;  %1627 = vmatpush3.msra.mxu0 %v2813_v52  ;;  %v329_v18 = vsel %vm293_vm14, %v2444_v59, 0.0  ;;  %vm386_vm15 = vcmp.eq.s32.totalorder %v2394_v20, %v2517_v46  ;;  %vm466_vm0 = vcmp.eq.s32.totalorder %v2394_v20, %v2505_v43  ;;  %v2838_v9 = vand.u32 4294901760, %v2830_v55 }
  0x9a   : > { %v738_v38 = vand.u32 4294901760, %v737_v27  ;;  %v3602_v35 = vand.u32 4294901760, %v2824_v57  ;;  %v422_v47 = vsel %vm386_vm15, %v2437_v53, %v329_v18  ;;  %vm544_vm1 = vcmp.eq.s32.totalorder %v2394_v20, %v2529_v51 }
  0x9b   : > { %3714 = vst [vmem:[#allocation26_spill] sm:$0xff] %v2838_v9  ;;  %v502_v45 = vsel %vm466_vm0, %v2461_v63, %v422_v47  ;;  %v2847_v50 = vsub.f32 %v2657_v2, %v2667_v62  ;;  %vm308_vm2 = vcmp.eq.s32.totalorder %v2397_v21, %v2488_v34  ;;  %1628 = vmatprep.subr.mxu0 %v2838_v9 }
  0x9c   : > { %1654 = vmatpush3.msra.mxu1 %v738_v38  ;;  %v856_v27 = vsub.f32 %v2824_v57, %v3602_v35  ;;  %v2856_v18 = vsel %vm544_vm1, %v2464_v14, %v502_v45  ;;  %v344_v47 = vsel %vm308_vm2, %v2444_v59, 0.0  ;;  %vm401_vm3 = vcmp.eq.s32.totalorder %v2397_v21, %v2517_v46 }
  0x9d   : > { %v2862_v20 = vand.u32 4294901760, %v2856_v18  ;;  %v3604_v2 = vand.u32 4294901760, %v2847_v50  ;;  %v437_v38 = vsel %vm401_vm3, %v2437_v53, %v344_v47  ;;  %vm481_vm4 = vcmp.eq.s32.totalorder %v2397_v21, %v2505_v43 }
  0x9e   : > { %v857_v58 = vand.u32 4294901760, %v856_v27  ;;  %v517_v35 = vsel %vm481_vm4, %v2461_v63, %v437_v38  ;;  %vm559_vm5 = vcmp.eq.s32.totalorder %v2397_v21, %v2529_v51  ;;  %v2873_v45 = vsub.f32 %v2675_v19, %v2683_v6 }
  0x9f   : > { %3715 = vst [vmem:[#allocation27_spill] sm:$0xff] %v2862_v20  ;;  %1629 = vmatpush3.msra.mxu0 %v2862_v20  ;;  %v744_v11 = vsub.f32 %v2847_v50, %v3604_v2  ;;  %v2880_v47 = vsel %vm559_vm5, %v2464_v14, %v517_v35  ;;  %vm292_vm6 = vcmp.eq.s32.totalorder %v2400_v22, %v2488_v34 }
  0xa0   : > { %vm385_vm7 = vcmp.eq.s32.totalorder %v2400_v22, %v2517_v46  ;;  %1655 = vmatprep.subr.mxu1 %v857_v58  ;;  %v2887_v21 = vand.u32 4294901760, %v2880_v47  ;;  %v3607_v19 = vand.u32 4294901760, %v2873_v45  ;;  %v328_v27 = vsel %vm292_vm6, %v2444_v59, 0.0 }
  0xa1   : > { %vm465_vm8 = vcmp.eq.s32.totalorder %v2400_v22, %v2505_v43  ;;  %v745_v38 = vand.u32 4294901760, %v744_v11  ;;  %v421_v35 = vsel %vm385_vm7, %v2437_v53, %v328_v27  ;;  %vm543_vm9 = vcmp.eq.s32.totalorder %v2400_v22, %v2529_v51 }
  0xa2   : > { %3716 = vst [vmem:[#allocation28_spill] sm:$0xff] %v2887_v21  ;;  %v2898_v2 = vsub.f32 %v2702_v12, %v2709_v49  ;;  %1630 = vmatprep.subr.mxu0 %v2887_v21  ;;  %v863_v58 = vsub.f32 %v2873_v45, %v3607_v19  ;;  %v501_v6 = vsel %vm465_vm8, %v2461_v63, %v421_v35 }
  0xa3   : > { %vm307_vm10 = vcmp.eq.s32.totalorder %v2403_v23, %v2488_v34  ;;  %vm400_vm11 = vcmp.eq.s32.totalorder %v2403_v23, %v2517_v46  ;;  %1656 = vmatpush3.msra.mxu1 %v745_v38  ;;  %v2910_v22 = vsel %vm543_vm9, %v2464_v14, %v501_v6  ;;  %vm480_vm12 = vcmp.eq.s32.totalorder %v2403_v23, %v2505_v43 }
  0xa4   : > { %v3610_v11 = vand.u32 4294901760, %v2898_v2  ;;  %v343_v12 = vsel %vm307_vm10, %v2444_v59, 0.0  ;;  %v864_v27 = vand.u32 4294901760, %v863_v58  ;;  %v2917_v35 = vand.u32 4294901760, %v2910_v22 }
  0xa5   : > { %v436_v19 = vsel %vm400_vm11, %v2437_v53, %v343_v12  ;;  %vm558_vm13 = vcmp.eq.s32.totalorder %v2403_v23, %v2529_v51  ;;  %v2928_v49 = vsub.f32 %v2726_v56, %v2734_v4  ;;  %vm291_vm14 = vcmp.eq.s32.totalorder %v2406_v24, %v2488_v34 }
  0xa6   : > { %3717 = vst [vmem:[#allocation29_spill] sm:$0xff] %v2917_v35  ;;  %v751_v6 = vsub.f32 %v2898_v2, %v3610_v11  ;;  %v516_v38 = vsel %vm480_vm12, %v2461_v63, %v436_v19  ;;  %1657 = vmatprep.subr.mxu1 %v864_v27  ;;  %1631 = vmatpush3.msra.mxu0 %v2917_v35  ;;  %v327_v23 = vsel %vm291_vm14, %v2444_v59, 0.0 }
  0xa7   : > { %v2934_v58 = vsel %vm558_vm13, %v2464_v14, %v516_v38  ;;  %vm384_vm15 = vcmp.eq.s32.totalorder %v2406_v24, %v2517_v46  ;;  %vm464_vm0 = vcmp.eq.s32.totalorder %v2406_v24, %v2505_v43  ;;  %v3613_v12 = vand.u32 4294901760, %v2928_v49 }
  0xa8   : > { %v752_v19 = vand.u32 4294901760, %v751_v6  ;;  %v2942_v56 = vand.u32 4294901760, %v2934_v58  ;;  %v420_v27 = vsel %vm384_vm15, %v2437_v53, %v327_v23  ;;  %vm542_vm1 = vcmp.eq.s32.totalorder %v2406_v24, %v2529_v51 }
  0xa9   : > { %v500_v11 = vsel %vm464_vm0, %v2461_v63, %v420_v27  ;;  %v2951_v38 = vsub.f32 %v2752_v48, %v2758_v15  ;;  %vm306_vm2 = vcmp.eq.s32.totalorder %v2409_v25, %v2488_v34  ;;  %v870_v6 = vsub.f32 %v2928_v49, %v3613_v12 }
  0xaa   : > { %3718 = vst [vmem:[#allocation30_spill] sm:$0xff] %v2942_v56  ;;  %1658 = vmatpush3.msra.mxu1 %v752_v19  ;;  %1632 = vmatprep.subr.mxu0 %v2942_v56  ;;  %v2960_v23 = vsel %vm542_vm1, %v2464_v14, %v500_v11  ;;  %v342_v27 = vsel %vm306_vm2, %v2444_v59, 0.0  ;;  %vm399_vm3 = vcmp.eq.s32.totalorder %v2409_v25, %v2517_v46 }
  0xab   : > { %v2966_v24 = vand.u32 4294901760, %v2960_v23  ;;  %v3616_v48 = vand.u32 4294901760, %v2951_v38  ;;  %v435_v19 = vsel %vm399_vm3, %v2437_v53, %v342_v27  ;;  %vm479_vm4 = vcmp.eq.s32.totalorder %v2409_v25, %v2505_v43 }
  0xac   : > { %v871_v15 = vand.u32 4294901760, %v870_v6  ;;  %v515_v12 = vsel %vm479_vm4, %v2461_v63, %v435_v19  ;;  %vm557_vm5 = vcmp.eq.s32.totalorder %v2409_v25, %v2529_v51  ;;  %v2977_v11 = vsub.f32 %v2776_v7, %v2783_v16 }
  0xad   : > { %3719 = vst [vmem:[#allocation31_spill] sm:$0xff] %v2966_v24  ;;  %1633 = vmatpush3.msra.mxu0 %v2966_v24  ;;  %v758_v4 = vsub.f32 %v2951_v38, %v3616_v48  ;;  %v2984_v27 = vsel %vm557_vm5, %v2464_v14, %v515_v12  ;;  %vm290_vm6 = vcmp.eq.s32.totalorder %v2412_v26, %v2488_v34 }
  0xae   : > { %vm383_vm7 = vcmp.eq.s32.totalorder %v2412_v26, %v2517_v46  ;;  %1659 = vmatprep.subr.mxu1 %v871_v15  ;;  %v2991_v25 = vand.u32 4294901760, %v2984_v27  ;;  %v3619_v7 = vand.u32 4294901760, %v2977_v11  ;;  %v326_v6 = vsel %vm290_vm6, %v2444_v59, 0.0 }
  0xaf   : > { %vm463_vm8 = vcmp.eq.s32.totalorder %v2412_v26, %v2505_v43  ;;  %v759_v19 = vand.u32 4294901760, %v758_v4  ;;  %v419_v12 = vsel %vm383_vm7, %v2437_v53, %v326_v6  ;;  %vm541_vm9 = vcmp.eq.s32.totalorder %v2412_v26, %v2529_v51 }
  0xb0   : > { %3720 = vst [vmem:[#allocation32_spill] sm:$0xff] %v2991_v25  ;;  %v3002_v48 = vsub.f32 %v2806_v17, %v2813_v52  ;;  %1634 = vmatprep.subr.mxu0 %v2991_v25  ;;  %v877_v15 = vsub.f32 %v2977_v11, %v3619_v7  ;;  %v499_v16 = vsel %vm463_vm8, %v2461_v63, %v419_v12 }
  0xb1   : > { %vm305_vm10 = vcmp.eq.s32.totalorder %v2469_v28, %v2488_v34  ;;  %vm398_vm11 = vcmp.eq.s32.totalorder %v2469_v28, %v2517_v46  ;;  %1660 = vmatpush3.msra.mxu1 %v759_v19  ;;  %v3014_v26 = vsel %vm541_vm9, %v2464_v14, %v499_v16  ;;  %vm478_vm12 = vcmp.eq.s32.totalorder %v2469_v28, %v2505_v43 }
  0xb2   : > { %v3622_v4 = vand.u32 4294901760, %v3002_v48  ;;  %v341_v17 = vsel %vm305_vm10, %v2444_v59, 0.0  ;;  %v878_v6 = vand.u32 4294901760, %v877_v15  ;;  %v3021_v12 = vand.u32 4294901760, %v3014_v26 }
  0xb3   : > { %v434_v7 = vsel %vm398_vm11, %v2437_v53, %v341_v17  ;;  %vm556_vm13 = vcmp.eq.s32.totalorder %v2469_v28, %v2529_v51  ;;  %v3032_v52 = vsub.f32 %v2830_v55, %v2838_v9  ;;  %vm289_vm14 = vcmp.eq.s32.totalorder %v2472_v29, %v2488_v34 }
  0xb4   : > { %3721 = vst [vmem:[#allocation33_spill] sm:$0xff] %v3021_v12  ;;  %v765_v16 = vsub.f32 %v3002_v48, %v3622_v4  ;;  %v514_v19 = vsel %vm478_vm12, %v2461_v63, %v434_v7  ;;  %1661 = vmatprep.subr.mxu1 %v878_v6  ;;  %1635 = vmatpush3.msra.mxu0 %v3021_v12  ;;  %v325_v28 = vsel %vm289_vm14, %v2444_v59, 0.0 }
  0xb5   : > { %v3038_v15 = vsel %vm556_vm13, %v2464_v14, %v514_v19  ;;  %vm382_vm15 = vcmp.eq.s32.totalorder %v2472_v29, %v2517_v46  ;;  %vm462_vm0 = vcmp.eq.s32.totalorder %v2472_v29, %v2505_v43  ;;  %v3625_v17 = vand.u32 4294901760, %v3032_v52 }
  0xb6   : > { %v766_v7 = vand.u32 4294901760, %v765_v16  ;;  %v3046_v55 = vand.u32 4294901760, %v3038_v15  ;;  %v418_v6 = vsel %vm382_vm15, %v2437_v53, %v325_v28  ;;  %vm540_vm1 = vcmp.eq.s32.totalorder %v2472_v29, %v2529_v51 }
  0xb7   : > { %v498_v4 = vsel %vm462_vm0, %v2461_v63, %v418_v6  ;;  %v3055_v19 = vsub.f32 %v2856_v18, %v2862_v20  ;;  %vm304_vm2 = vcmp.eq.s32.totalorder %v2479_v31, %v2488_v34  ;;  %v884_v16 = vsub.f32 %v3032_v52, %v3625_v17 }
  0xb8   : > { %3722 = vst [vmem:[#allocation34_spill] sm:$0xff] %v3046_v55  ;;  %1662 = vmatpush3.msra.mxu1 %v766_v7  ;;  %1636 = vmatprep.subr.mxu0 %v3046_v55  ;;  %v3064_v28 = vsel %vm540_vm1, %v2464_v14, %v498_v4  ;;  %v340_v6 = vsel %vm304_vm2, %v2444_v59, 0.0  ;;  %vm397_vm3 = vcmp.eq.s32.totalorder %v2479_v31, %v2517_v46 }
  0xb9   : > { %v3070_v29 = vand.u32 4294901760, %v3064_v28  ;;  %v3628_v18 = vand.u32 4294901760, %v3055_v19  ;;  %v433_v7 = vsel %vm397_vm3, %v2437_v53, %v340_v6  ;;  %vm477_vm4 = vcmp.eq.s32.totalorder %v2479_v31, %v2505_v43 }
  0xba   : > { %v885_v20 = vand.u32 4294901760, %v884_v16  ;;  %v513_v17 = vsel %vm477_vm4, %v2461_v63, %v433_v7  ;;  %vm555_vm5 = vcmp.eq.s32.totalorder %v2479_v31, %v2529_v51  ;;  %v3081_v4 = vsub.f32 %v2880_v47, %v2887_v21 }
  0xbb   : > { %3723 = vst [vmem:[#allocation35_spill] sm:$0xff] %v3070_v29  ;;  %1637 = vmatpush3.msra.mxu0 %v3070_v29  ;;  %v772_v9 = vsub.f32 %v3055_v19, %v3628_v18  ;;  %v3088_v6 = vsel %vm555_vm5, %v2464_v14, %v513_v17  ;;  %vm288_vm6 = vcmp.eq.s32.totalorder %v2482_v32, %v2488_v34 }
  0xbc   : > { %vm381_vm7 = vcmp.eq.s32.totalorder %v2482_v32, %v2517_v46  ;;  %1663 = vmatprep.subr.mxu1 %v885_v20  ;;  %v3095_v31 = vand.u32 4294901760, %v3088_v6  ;;  %v3631_v47 = vand.u32 4294901760, %v3081_v4  ;;  %v324_v16 = vsel %vm288_vm6, %v2444_v59, 0.0 }
  0xbd   : > { %vm461_vm8 = vcmp.eq.s32.totalorder %v2482_v32, %v2505_v43  ;;  %v773_v7 = vand.u32 4294901760, %v772_v9  ;;  %v417_v17 = vsel %vm381_vm7, %v2437_v53, %v324_v16  ;;  %vm539_vm9 = vcmp.eq.s32.totalorder %v2482_v32, %v2529_v51 }
  0xbe   : > { %3724 = vst [vmem:[#allocation36_spill] sm:$0xff] %v3095_v31  ;;  %v3106_v18 = vsub.f32 %v2910_v22, %v2917_v35  ;;  %1638 = vmatprep.subr.mxu0 %v3095_v31  ;;  %v891_v20 = vsub.f32 %v3081_v4, %v3631_v47  ;;  %v497_v21 = vsel %vm461_vm8, %v2461_v63, %v417_v17 }
  0xbf   : > { %vm303_vm10 = vcmp.eq.s32.totalorder %v2485_v33, %v2488_v34  ;;  %vm396_vm11 = vcmp.eq.s32.totalorder %v2485_v33, %v2517_v46  ;;  %1664 = vmatpush3.msra.mxu1 %v773_v7  ;;  %v3118_v32 = vsel %vm539_vm9, %v2464_v14, %v497_v21  ;;  %vm476_vm12 = vcmp.eq.s32.totalorder %v2485_v33, %v2505_v43 }
  0xc0   : > { %v3634_v9 = vand.u32 4294901760, %v3106_v18  ;;  %v339_v22 = vsel %vm303_vm10, %v2444_v59, 0.0  ;;  %v892_v16 = vand.u32 4294901760, %v891_v20  ;;  %v3125_v17 = vand.u32 4294901760, %v3118_v32 }
  0xc1   : > { %v432_v47 = vsel %vm396_vm11, %v2437_v53, %v339_v22  ;;  %vm554_vm13 = vcmp.eq.s32.totalorder %v2485_v33, %v2529_v51  ;;  %v3136_v35 = vsub.f32 %v2934_v58, %v2942_v56  ;;  %vm287_vm14 = vcmp.eq.s32.totalorder %v2493_v37, %v2488_v34 }
  0xc2   : > { %3725 = vst [vmem:[#allocation37_spill] sm:$0xff] %v3125_v17  ;;  %v779_v21 = vsub.f32 %v3106_v18, %v3634_v9  ;;  %v512_v7 = vsel %vm476_vm12, %v2461_v63, %v432_v47  ;;  %1665 = vmatprep.subr.mxu1 %v892_v16  ;;  %1639 = vmatpush3.msra.mxu0 %v3125_v17  ;;  %v323_v33 = vsel %vm287_vm14, %v2444_v59, 0.0 }
  0xc3   : > { %v3142_v20 = vsel %vm554_vm13, %v2464_v14, %v512_v7  ;;  %vm380_vm15 = vcmp.eq.s32.totalorder %v2493_v37, %v2517_v46  ;;  %vm460_vm0 = vcmp.eq.s32.totalorder %v2493_v37, %v2505_v43  ;;  %v3637_v22 = vand.u32 4294901760, %v3136_v35 }
  0xc4   : > { %v780_v47 = vand.u32 4294901760, %v779_v21  ;;  %v3150_v58 = vand.u32 4294901760, %v3142_v20  ;;  %v416_v16 = vsel %vm380_vm15, %v2437_v53, %v323_v33  ;;  %vm538_vm1 = vcmp.eq.s32.totalorder %v2493_v37, %v2529_v51 }
  0xc5   : > { %v496_v9 = vsel %vm460_vm0, %v2461_v63, %v416_v16  ;;  %v3159_v7 = vsub.f32 %v2960_v23, %v2966_v24  ;;  %vm302_vm2 = vcmp.eq.s32.totalorder %v2496_v39, %v2488_v34  ;;  %v898_v21 = vsub.f32 %v3136_v35, %v3637_v22 }
  0xc6   : > { %3726 = vst [vmem:[#allocation38_spill] sm:$0xff] %v3150_v58  ;;  %1666 = vmatpush3.msra.mxu1 %v780_v47  ;;  %1640 = vmatprep.subr.mxu0 %v3150_v58  ;;  %v3168_v33 = vsel %vm538_vm1, %v2464_v14, %v496_v9  ;;  %v338_v16 = vsel %vm302_vm2, %v2444_v59, 0.0  ;;  %vm395_vm3 = vcmp.eq.s32.totalorder %v2496_v39, %v2517_v46 }
  0xc7   : > { %v3174_v37 = vand.u32 4294901760, %v3168_v33  ;;  %v3640_v23 = vand.u32 4294901760, %v3159_v7  ;;  %v431_v47 = vsel %vm395_vm3, %v2437_v53, %v338_v16  ;;  %vm475_vm4 = vcmp.eq.s32.totalorder %v2496_v39, %v2505_v43 }
  0xc8   : > { %v899_v24 = vand.u32 4294901760, %v898_v21  ;;  %v511_v22 = vsel %vm475_vm4, %v2461_v63, %v431_v47  ;;  %vm553_vm5 = vcmp.eq.s32.totalorder %v2496_v39, %v2529_v51  ;;  %v3185_v9 = vsub.f32 %v2984_v27, %v2991_v25 }
  0xc9   : > { %3727 = vst [vmem:[#allocation39_spill] sm:$0xff] %v3174_v37  ;;  %1641 = vmatpush3.msra.mxu0 %v3174_v37  ;;  %v786_v56 = vsub.f32 %v3159_v7, %v3640_v23  ;;  %v3192_v16 = vsel %vm553_vm5, %v2464_v14, %v511_v22  ;;  %vm286_vm6 = vcmp.eq.s32.totalorder %v2499_v40, %v2488_v34 }
  0xca   : > { %vm379_vm7 = vcmp.eq.s32.totalorder %v2499_v40, %v2517_v46  ;;  %1667 = vmatprep.subr.mxu1 %v899_v24  ;;  %v3199_v39 = vand.u32 4294901760, %v3192_v16  ;;  %v3643_v27 = vand.u32 4294901760, %v3185_v9  ;;  %v322_v21 = vsel %vm286_vm6, %v2444_v59, 0.0 }
  0xcb   : > { %vm459_vm8 = vcmp.eq.s32.totalorder %v2499_v40, %v2505_v43  ;;  %v787_v47 = vand.u32 4294901760, %v786_v56  ;;  %v415_v22 = vsel %vm379_vm7, %v2437_v53, %v322_v21  ;;  %vm537_vm9 = vcmp.eq.s32.totalorder %v2499_v40, %v2529_v51 }
  0xcc   : > { %3728 = vst [vmem:[#allocation40_spill] sm:$0xff] %v3199_v39  ;;  %v3210_v23 = vsub.f32 %v3014_v26, %v3021_v12  ;;  %1642 = vmatprep.subr.mxu0 %v3199_v39  ;;  %v905_v24 = vsub.f32 %v3185_v9, %v3643_v27  ;;  %v495_v25 = vsel %vm459_vm8, %v2461_v63, %v415_v22 }
  0xcd   : > { %vm301_vm10 = vcmp.eq.s32.totalorder %v2502_v41, %v2488_v34  ;;  %vm394_vm11 = vcmp.eq.s32.totalorder %v2502_v41, %v2517_v46  ;;  %1668 = vmatpush3.msra.mxu1 %v787_v47  ;;  %v3222_v40 = vsel %vm537_vm9, %v2464_v14, %v495_v25  ;;  %vm474_vm12 = vcmp.eq.s32.totalorder %v2502_v41, %v2505_v43 }
  0xce   : > { %v3646_v56 = vand.u32 4294901760, %v3210_v23  ;;  %v337_v26 = vsel %vm301_vm10, %v2444_v59, 0.0  ;;  %v906_v21 = vand.u32 4294901760, %v905_v24  ;;  %v3229_v22 = vand.u32 4294901760, %v3222_v40  ;;  %v220_v24 = vld [vmem:[%s185_s10] sm:$0xff] }
  0xcf   : > { %v430_v27 = vsel %vm394_vm11, %v2437_v53, %v337_v26  ;;  %vm552_vm13 = vcmp.eq.s32.totalorder %v2502_v41, %v2529_v51  ;;  %v3240_v12 = vsub.f32 %v3038_v15, %v3046_v55  ;;  %vm285_vm14 = vcmp.eq.s32.totalorder %v2343_v1, %v2488_v34 }
  0xd0   : > { %v793_v25 = vsub.f32 %v3210_v23, %v3646_v56  ;;  %v510_v47 = vsel %vm474_vm12, %v2461_v63, %v430_v27  ;;  %1669 = vmatprep.subr.mxu1 %v906_v21  ;;  %1643 = vmatpush3.msra.mxu0 %v3229_v22  ;;  %v321_v26 = vsel %vm285_vm14, %v2444_v59, 0.0  ;;  %vm378_vm15 = vcmp.eq.s32.totalorder %v2343_v1, %v2517_v46 }
  0xd1   : > { %v588_v41 = vsel %vm552_vm13, %v2464_v14, %v510_v47  ;;  %vm458_vm0 = vcmp.eq.s32.totalorder %v2343_v1, %v2505_v43  ;;  %v3648_v34 = vand.u32 4294901760, %v3240_v12  ;;  %v414_v56 = vsel %vm378_vm15, %v2437_v53, %v321_v26 }
  0xd2   : > { %v794_v15 = vand.u32 4294901760, %v793_v25  ;;  %v3253_v27 = vand.u32 4294901760, %v588_v41  ;;  %v494_v21 = vsel %vm458_vm0, %v2461_v63, %v414_v56  ;;  %vm536_vm1 = vcmp.eq.s32.totalorder %v2343_v1, %v2529_v51 }
  0xd3   : > { %v3262_v59 = vsub.f32 %v3064_v28, %v3070_v29  ;;  %v605_v46 = vcombine.high %v220_v24, %v220_v24  ;;  %v912_v43 = vsub.f32 %v3240_v12, %v3648_v34  ;;  %v572_v25 = vsel %vm536_vm1, %v2464_v14, %v494_v21 }
  0xd4   : > { %1670 = vmatpush3.msra.mxu1 %v794_v15  ;;  %1644 = vmatprep.subr.mxu0 %v3253_v27  ;;  %v3269_v53 = vand.u32 4294901760, %v220_v24  ;;  %v3273_v63 = vsub.f32 %v3088_v6, %v3095_v31  ;;  %v3275_v1 = vand.u32 4294901760, %v572_v25  ;;  %v3282_v56 = vsub.f32 %v3118_v32, %v3125_v17 }
  0xd5   : > { %v3647_v51 = vand.u32 4294901760, %v3262_v59  ;;  %v3278_v28 = vand.u32 4294901760, %v605_v46  ;;  %v913_v47 = vand.u32 4294901760, %v912_v43  ;;  %v3290_v6 = vsub.f32 %v3142_v20, %v3150_v58 }
  0xd6   : > { %3729 = vst [vmem:[#allocation41_spill] sm:$0xff] %v3269_v53  ;;  %v3651_v26 = vand.u32 4294901760, %v3273_v63  ;;  %v3286_v14 = vsub.f32 %v220_v24, %v3269_v53  ;;  %1645 = vmatpush3.msra.mxu0 %v3275_v1  ;;  %v3658_v32 = vand.u32 4294901760, %v3282_v56  ;;  %v3302_v43 = vsub.f32 %v3168_v33, %v3174_v37 }
  0xd7   : > { %3730 = vst [vmem:[#allocation42_spill] sm:$0xff] %v3278_v28  ;;  %v800_v15 = vsub.f32 %v3262_v59, %v3647_v51  ;;  %v3297_v21 = vsub.f32 %v605_v46, %v3278_v28  ;;  %944 = vmatprep.mubr.f32.mxu1 %v3278_v28  ;;  %1671 = vmatprep.subr.mxu1 %v913_v47  ;;  %v3662_v46 = vand.u32 4294901760, %v3290_v6 }
  0xd8   : > { %v919_v20 = vsub.f32 %v3273_v63, %v3651_v26  ;;  %1684 = vmatprep.subr.mxu0 %v2663_v60  ;;  %v3659_v24 = vand.u32 4294901760, %v3286_v14  ;;  %v3313_v51 = vsub.f32 %v3192_v16, %v3199_v39  ;;  %v807_v47 = vsub.f32 %v3282_v56, %v3658_v32 }
  0xd9   : > { %v801_v34 = vand.u32 4294901760, %v800_v15  ;;  %v3663_v33 = vand.u32 4294901760, %v3297_v21  ;;  %v3665_v28 = vand.u32 4294901760, %v3302_v43  ;;  %v926_v58 = vsub.f32 %v3290_v6, %v3662_v46 }
  0xda   : > { %v920_v26 = vand.u32 4294901760, %v919_v20  ;;  %v712_v37 = vsub.f32 %v3286_v14, %v3659_v24  ;;  %v3669_v16 = vand.u32 4294901760, %v3313_v51  ;;  %v808_v39 = vand.u32 4294901760, %v807_v47 }
  0xdb   : > { %1672 = vmatpush3.msra.mxu1 %v801_v34  ;;  %v706_v15 = vsub.f32 %v3297_v21, %v3663_v33  ;;  %v814_v20 = vsub.f32 %v3302_v43, %v3665_v28  ;;  %v3335_v32 = vsub.f32 %v3222_v40, %v3229_v22  ;;  %v927_v17 = vand.u32 4294901760, %v926_v58 }
  0xdc   : > { %1673 = vmatprep.subr.mxu1 %v920_v26  ;;  %v713_v24 = vand.u32 4294901760, %v712_v37  ;;  %v933_v34 = vsub.f32 %v3313_v51, %v3669_v16  ;;  %v3341_v46 = vsub.f32 %v588_v41, %v3253_v27  ;;  %v3345_v28 = vsub.f32 %v572_v25, %v3275_v1 }
  0xdd   : > { %3731 = vst [vmem:[#allocation43_spill] sm:$0xff] %v3335_v32  ;;  %v707_v33 = vand.u32 4294901760, %v706_v15  ;;  %1674 = vmatpush3.msra.mxu1 %v808_v39  ;;  %v815_v47 = vand.u32 4294901760, %v814_v20  ;;  %v3668_v60 = vand.u32 4294901760, %v3335_v32  ;;  %v3734_v15 = vld [vmem:[#allocation21_spill] sm:$0xff]  ;;  %v3735_v20 = vld [vmem:[#allocation22_spill] sm:$0xff] }
  0xde   : > { %3732 = vst [vmem:[#allocation44_spill] sm:$0xff] %v3345_v28  ;;  %1675 = vmatprep.subr.mxu1 %v927_v17  ;;  %v934_v40 = vand.u32 4294901760, %v933_v34  ;;  %v3667_v37 = vand.u32 4294901760, %v3341_v46  ;;  %v3666_v41 = vand.u32 4294901760, %v3345_v28  ;;  %v3736_v34 = vld [vmem:[#allocation23_spill] sm:$0xff] }
  0xdf   : > { %708 = vmatprep.mubr.f32.mxu0 %v707_v33  ;;  %1676 = vmatpush3.msra.mxu1 %v815_v47  ;;  %v821_v58 = vsub.f32 %v3335_v32, %v3668_v60  ;;  %v3733_v33 = vld [vmem:[#allocation20_spill] sm:$0xff]  ;;  %v3747_v60 = vld [vmem:[#allocation19_spill] sm:$0xff] }
  0xe0   : > { %714 = vmatmul.mubr.f32.vlgmr.msra.gmra.mxu0 %v713_v24  ;;  %1677 = vmatprep.subr.mxu1 %v934_v40  ;;  %v940_v39 = vsub.f32 %v3341_v46, %v3667_v37  ;;  %v828_v25 = vsub.f32 %v3345_v28, %v3666_v41  ;;  %v3737_v47 = vld [vmem:[#allocation24_spill] sm:$0xff]  ;;  %v3738_v40 = vld [vmem:[#allocation25_spill] sm:$0xff]  ;;  %v3748_v16 = vand.u32 4294901760, %v3747_v60  ;;  %v3756_v60 = vand.u32 4294901760, %v2769_v5 }
  0xe1   : > { %1685 = vmatpush3.msra.mxu0 %v2690_v36  ;;  %v822_v17 = vand.u32 4294901760, %v821_v58  ;;  %1081 = vmatprep.mubr.f32.mxu0 %v3297_v21  ;;  %v3739_v58 = vld [vmem:[#allocation26_spill] sm:$0xff]  ;;  %v3745_v41 = vld [vmem:[#allocation32_spill] sm:$0xff]  ;;  %v3746_v37 = vld [vmem:[#allocation33_spill] sm:$0xff] }
  0xe2   : > { %1686 = vmatprep.subr.mxu0 %v2720_v10  ;;  %v941_v26 = vand.u32 4294901760, %v940_v39  ;;  %v829_v24 = vand.u32 4294901760, %v828_v25  ;;  %v3740_v39 = vld [vmem:[#allocation27_spill] sm:$0xff]  ;;  %v3742_v25 = vld [vmem:[#allocation29_spill] sm:$0xff] }
  0xe3   : > { %1687 = vmatpush3.msra.mxu0 %v2743_v44  ;;  %1678 = vmatpush3.msra.mxu1 %v822_v17  ;;  %v3741_v17 = vld [vmem:[#allocation28_spill] sm:$0xff] }
  0xe4   : > { %1688 = vmatprep.subr.mxu0 %v2769_v5  ;;  %1679 = vmatprep.subr.mxu1 %v941_v26  ;;  %v3743_v26 = vld [vmem:[#allocation30_spill] sm:$0xff]  ;;  %v3761_v5 = vand.u32 4294901760, %v3286_v14 }
  0xe5   : > { %1689 = vmatpush3.msra.mxu0 %v2794_v13  ;;  %1680 = vmatpush3.msra.mxu1 %v829_v24  ;;  %v3744_v24 = vld [vmem:[#allocation31_spill] sm:$0xff] }
  0xe6   : > { %1690 = vmatprep.subr.mxu0 %v2824_v57  ;;  %946 = vmatmul.mubr.f32.vlgmr.msra.gmra.mxu1 %v3269_v53  ;;  %v3749_v53 = vld [vmem:[#allocation37_spill] sm:$0xff] }
  0xe7   : > { %1691 = vmatpush3.msra.mxu0 %v2847_v50  ;;  %1719 = vmatprep.subr.mxu1 %v2558_v61 }
  0xe8   : > { %1692 = vmatprep.subr.mxu0 %v2873_v45  ;;  %1720 = vmatpush3.msra.mxu1 %v2561_v3 }
  0xe9   : > { %1693 = vmatpush3.msra.mxu0 %v2898_v2  ;;  %1721 = vmatprep.subr.mxu1 %v2568_v0 }
  0xea   : > { %1694 = vmatprep.subr.mxu0 %v2928_v49  ;;  %1722 = vmatpush3.msra.mxu1 %v2594_v30 }
  0xeb   : > { %1695 = vmatpush3.msra.mxu0 %v2951_v38  ;;  %1723 = vmatprep.subr.mxu1 %v2610_v42 }
  0xec   : > { %1696 = vmatprep.subr.mxu0 %v2977_v11  ;;  %1724 = vmatpush3.msra.mxu1 %v2627_v8 }
  0xed   : > { %1697 = vmatpush3.msra.mxu0 %v3002_v48  ;;  %1725 = vmatprep.subr.mxu1 %v2650_v54 }
  0xee   : > { %1698 = vmatprep.subr.mxu0 %v3032_v52  ;;  %1726 = vmatpush3.msra.mxu1 %v2667_v62 }
  0xef   : > { %1699 = vmatpush3.msra.mxu0 %v3055_v19  ;;  %1727 = vmatprep.subr.mxu1 %v3733_v33 }
  0xf0   : > { %1700 = vmatprep.subr.mxu0 %v3081_v4  ;;  %1728 = vmatpush3.msra.mxu1 %v3734_v15 }
  0xf1   : > { %1701 = vmatpush3.msra.mxu0 %v3106_v18  ;;  %1729 = vmatprep.subr.mxu1 %v3735_v20 }
  0xf2   : > { %1702 = vmatprep.subr.mxu0 %v3136_v35  ;;  %1730 = vmatpush3.msra.mxu1 %v3736_v34 }
  0xf3   : > { %1703 = vmatpush3.msra.mxu0 %v3159_v7  ;;  %1731 = vmatprep.subr.mxu1 %v3737_v47 }
  0xf4   : > { %1704 = vmatprep.subr.mxu0 %v3185_v9  ;;  %1732 = vmatpush3.msra.mxu1 %v3738_v40 }
  0xf5   : > { %1705 = vmatpush3.msra.mxu0 %v3210_v23  ;;  %1733 = vmatprep.subr.mxu1 %v3739_v58 }
  0xf6   : > { %1706 = vmatprep.subr.mxu0 %v3240_v12  ;;  %1734 = vmatpush3.msra.mxu1 %v3740_v39 }
  0xf7   : > { %1707 = vmatpush3.msra.mxu0 %v3262_v59  ;;  %1735 = vmatprep.subr.mxu1 %v3741_v17 }
  0xf8   : > { %1708 = vmatprep.subr.mxu0 %v3273_v63  ;;  %1736 = vmatpush3.msra.mxu1 %v3742_v25 }
  0xf9   : > { %1709 = vmatpush3.msra.mxu0 %v3282_v56  ;;  %1737 = vmatprep.subr.mxu1 %v3743_v26 }
  0xfa   : > { %1710 = vmatprep.subr.mxu0 %v3290_v6  ;;  %1738 = vmatpush3.msra.mxu1 %v3744_v24 }
  0xfb   : > { %1711 = vmatpush3.msra.mxu0 %v3302_v43  ;;  %1739 = vmatprep.subr.mxu1 %v3745_v41 }
  0xfc   : > { %1712 = vmatprep.subr.mxu0 %v3313_v51  ;;  %1740 = vmatpush3.msra.mxu1 %v3746_v37  ;;  %v3750_v37 = vand.u32 4294901760, %v2690_v36  ;;  %v3757_v36 = vand.u32 4294901760, %v2794_v13  ;;  %v3763_v13 = vand.u32 4294901760, %v2898_v2  ;;  %v3777_v2 = vand.u32 4294901760, %v3262_v59 }
  0xfd   : > { %1713 = vmatpush3.msra.mxu0 %v3335_v32  ;;  %1741 = vmatprep.subr.mxu1 %v3046_v55  ;;  %v3751_v32 = vld [vmem:[#allocation38_spill] sm:$0xff]  ;;  %v3752_v55 = vand.u32 4294901760, %v2720_v10  ;;  %v3758_v10 = vand.u32 4294901760, %v2824_v57  ;;  %v3764_v57 = vand.u32 4294901760, %v2928_v49  ;;  %v3775_v49 = vand.u32 4294901760, %v3210_v23 }
  0xfe   : > { %1714 = vmatprep.subr.mxu0 %v3341_v46  ;;  %1742 = vmatpush3.msra.mxu1 %v3070_v29  ;;  %v3753_v29 = vld [vmem:[#allocation39_spill] sm:$0xff]  ;;  %v3787_v23 = vld [vmem:[#allocation34_spill] sm:$0xff] }
  0xff   : > { %1715 = vmatpush3.msra.mxu0 %v3345_v28  ;;  %1743 = vmatprep.subr.mxu1 %v3095_v31  ;;  %v3754_v28 = vand.u32 4294901760, %v2743_v44  ;;  %v3755_v31 = vld [vmem:[#allocation40_spill] sm:$0xff]  ;;  %v3759_v44 = vand.u32 4294901760, %v3297_v21 }
 0x100   : > { %1084 = vmatmul.mubr.f32.vlgmr.msra.gmra.mxu0 %v3286_v14  ;;  %1754 = vmatprep.subr.mxu0 %v3748_v16  ;;  %v3793_v14 = vld [vmem:[#allocation36_spill] sm:$0xff] }
 0x101   : > { %1744 = vmatpush3.msra.mxu1 %v3749_v53  ;;  %1755 = vmatpush3.msra.mxu0 %v3750_v37 }
 0x102   : > { %1745 = vmatprep.subr.mxu1 %v3751_v32  ;;  %1756 = vmatprep.subr.mxu0 %v3752_v55  ;;  %v3760_v55 = vand.u32 4294901760, %v2847_v50  ;;  %v3765_v50 = vand.u32 4294901760, %v2951_v38  ;;  %v3779_v38 = vand.u32 4294901760, %v3282_v56  ;;  %v3791_v56 = vld [vmem:[#allocation35_spill] sm:$0xff] }
 0x103   : > { %1746 = vmatpush3.msra.mxu1 %v3753_v29  ;;  %1757 = vmatpush3.msra.mxu0 %v3754_v28  ;;  %v3762_v28 = vand.u32 4294901760, %v2873_v45  ;;  %v3766_v45 = vand.u32 4294901760, %v2977_v11  ;;  %v3781_v11 = vand.u32 4294901760, %v3302_v43 }
 0x104   : > { %1747 = vmatprep.subr.mxu1 %v3755_v31  ;;  %1758 = vmatprep.subr.mxu0 %v3756_v60 }
 0x105   : > { %1748 = vmatpush3.msra.mxu1 %v3229_v22  ;;  %1759 = vmatpush3.msra.mxu0 %v3757_v36 }
 0x106   : > { %1749 = vmatprep.subr.mxu1 %v3253_v27  ;;  %1760 = vmatprep.subr.mxu0 %v3758_v10 }
 0x107   : > { %1750 = vmatpush3.msra.mxu1 %v3275_v1  ;;  %1188 = vmatprep.mubr.f32.mxu1 %v3759_v44 }
 0x108   : > { %1761 = vmatpush3.msra.mxu0 %v3760_v55  ;;  %1192 = vmatmul.mubr.f32.vlgmr.msra.gmra.mxu1 %v3761_v5 }
 0x109   : > { %1762 = vmatprep.subr.mxu0 %v3762_v28  ;;  %1789 = vmatprep.subr.mxu1 %v2558_v61  ;;  %v3767_v61 = vand.u32 4294901760, %v3002_v48  ;;  %v3780_v48 = vand.u32 4294901760, %v3290_v6 }
 0x10a   : > { %1763 = vmatpush3.msra.mxu0 %v3763_v13  ;;  %1790 = vmatpush3.msra.mxu1 %v2561_v3  ;;  %v3768_v3 = vand.u32 4294901760, %v3032_v52  ;;  %v3776_v52 = vand.u32 4294901760, %v3240_v12  ;;  %v3782_v12 = vand.u32 4294901760, %v3313_v51  ;;  %v3792_v51 = vld [vmem:[#allocation41_spill] sm:$0xff] }
 0x10b   : > { %1764 = vmatprep.subr.mxu0 %v3764_v57  ;;  %1791 = vmatprep.subr.mxu1 %v2568_v0  ;;  %v3769_v0 = vand.u32 4294901760, %v3055_v19  ;;  %v3783_v19 = vld [vmem:[#allocation43_spill] sm:$0xff] }
 0x10c   : > { %1765 = vmatpush3.msra.mxu0 %v3765_v50  ;;  %1792 = vmatpush3.msra.mxu1 %v2594_v30  ;;  %v3770_v30 = vand.u32 4294901760, %v3081_v4  ;;  %v3785_v4 = vld [vmem:[#allocation33_spill] sm:$0xff] }
 0x10d   : > { %1766 = vmatprep.subr.mxu0 %v3766_v45  ;;  %1793 = vmatprep.subr.mxu1 %v2610_v42  ;;  %v3771_v42 = vand.u32 4294901760, %v3106_v18  ;;  %v3784_v18 = vand.u32 4294901760, %v3783_v19 }
 0x10e   : > { %1767 = vmatpush3.msra.mxu0 %v3767_v61  ;;  %1794 = vmatpush3.msra.mxu1 %v2627_v8  ;;  %v3772_v8 = vand.u32 4294901760, %v3136_v35  ;;  %v3778_v35 = vand.u32 4294901760, %v3273_v63  ;;  %v3790_v63 = vld [vmem:[#allocation42_spill] sm:$0xff] }
 0x10f   : > { %1768 = vmatprep.subr.mxu0 %v3768_v3  ;;  %1795 = vmatprep.subr.mxu1 %v2650_v54  ;;  %v3773_v54 = vand.u32 4294901760, %v3159_v7  ;;  %v3786_v7 = vand.u32 4294901760, %v3341_v46 }
 0x110   : > { %1769 = vmatpush3.msra.mxu0 %v3769_v0  ;;  %1796 = vmatpush3.msra.mxu1 %v2667_v62  ;;  %v3774_v62 = vand.u32 4294901760, %v3185_v9  ;;  %v3788_v9 = vld [vmem:[#allocation44_spill] sm:$0xff] }
 0x111   : > { %1770 = vmatprep.subr.mxu0 %v3770_v30  ;;  %1797 = vmatprep.subr.mxu1 %v3733_v33  ;;  %v3789_v59 = vand.u32 4294901760, %v3788_v9 }
 0x112   : > { %1771 = vmatpush3.msra.mxu0 %v3771_v42  ;;  %1798 = vmatpush3.msra.mxu1 %v3734_v15 }
 0x113   : > { %1772 = vmatprep.subr.mxu0 %v3772_v8  ;;  %1799 = vmatprep.subr.mxu1 %v3735_v20 }
 0x114   : > { %1773 = vmatpush3.msra.mxu0 %v3773_v54  ;;  %1800 = vmatpush3.msra.mxu1 %v3736_v34 }
 0x115   : > { %1774 = vmatprep.subr.mxu0 %v3774_v62  ;;  %1801 = vmatprep.subr.mxu1 %v3737_v47 }
 0x116   : > { %1775 = vmatpush3.msra.mxu0 %v3775_v49  ;;  %1802 = vmatpush3.msra.mxu1 %v3738_v40 }
 0x117   : > { %1776 = vmatprep.subr.mxu0 %v3776_v52  ;;  %1803 = vmatprep.subr.mxu1 %v3739_v58 }
 0x118   : > { %1777 = vmatpush3.msra.mxu0 %v3777_v2  ;;  %1804 = vmatpush3.msra.mxu1 %v3740_v39 }
 0x119   : > { %1778 = vmatprep.subr.mxu0 %v3778_v35  ;;  %1805 = vmatprep.subr.mxu1 %v3741_v17 }
 0x11a   : > { %1779 = vmatpush3.msra.mxu0 %v3779_v38  ;;  %1806 = vmatpush3.msra.mxu1 %v3742_v25 }
 0x11b   : > { %1780 = vmatprep.subr.mxu0 %v3780_v48  ;;  %1807 = vmatprep.subr.mxu1 %v3743_v26 }
 0x11c   : > { %1781 = vmatpush3.msra.mxu0 %v3781_v11  ;;  %1808 = vmatpush3.msra.mxu1 %v3744_v24 }
 0x11d   : > { %1782 = vmatprep.subr.mxu0 %v3782_v12  ;;  %1809 = vmatprep.subr.mxu1 %v3745_v41 }
 0x11e   : > { %1783 = vmatpush3.msra.mxu0 %v3784_v18  ;;  %1810 = vmatpush3.msra.mxu1 %v3785_v4 }
 0x11f   : > { %1784 = vmatprep.subr.mxu0 %v3786_v7  ;;  %1811 = vmatprep.subr.mxu1 %v3787_v23 }
 0x120   : > { %1785 = vmatpush3.msra.mxu0 %v3789_v59  ;;  %1358 = vmatprep.mubr.f32.mxu0 %v3790_v63 }
 0x121   : > { %1812 = vmatpush3.msra.mxu1 %v3791_v56  ;;  %1360 = vmatmul.mubr.f32.vlgmr.msra.gmra.mxu0 %v3792_v51 }
 0x122   : > { %1813 = vmatprep.subr.mxu1 %v3793_v14  ;;  %1462 = vmatprep.mubr.f32.mxu1 %v3790_v63 }
 0x123   : > { %1814 = vmatpush3.msra.mxu1 %v3749_v53 }
 0x124   : > { %1815 = vmatprep.subr.mxu1 %v3751_v32 }
 0x125   : > { %1816 = vmatpush3.msra.mxu1 %v3753_v29 }
 0x126   : > { %1817 = vmatprep.subr.mxu1 %v3755_v31 }
 0x127   : > { %1818 = vmatpush3.msra.mxu1 %v3229_v22 }
 0x128   : > { %1819 = vmatprep.subr.mxu1 %v3253_v27 }
 0x129   : > { %1820 = vmatpush3.msra.mxu1 %v3275_v1 }
 0x12a   : > { %1464 = vmatmul.mubr.f32.vlgmr.msra.gmra.mxu1 %v3792_v51 }
 0x1a0   : > { %v1646_v6 = vpop.f32.mrf.mxu0 }
 0x1a2   : > { %v1647_v21 = vpop.f32.mrf.mxu0 }
 0x1a3   : > { %v1648_v22 = vadd.f32 %v1647_v21, %v1646_v6 }
 0x1a6   : > { %v1681_v43 = vpop.f32.mrf.mxu1 }
 0x1a8   : > { %v1682_v32 = vpop.f32.mrf.mxu1 }
 0x1a9   : > { %v1683_v31 = vadd.f32 %v1682_v32, %v1681_v43 }
 0x1ab   : > { %v948_v1 = vadd.f32 %v1683_v31, %v1648_v22 }
 0x1c0   : > { %v1716_v53 = vpop.f32.mrf.mxu0 }
 0x1c2   : > { %v1717_v46 = vpop.f32.mrf.mxu0 }
 0x1c3   : > { %v1718_v41 = vadd.f32 %v1717_v46, %v1716_v53 }
 0x1c5   : > { %v1086_v15 = vadd.f32 %v1718_v41, %v948_v1 }
 0x1c8   : > { %v1751_v29 = vpop.f32.mrf.mxu1 }
 0x1ca   : > { %v1752_v37 = vpop.f32.mrf.mxu1 }
 0x1cb   : > { %v1753_v33 = vadd.f32 %v1752_v37, %v1751_v29 }
 0x1cd   : > { %v1194_v47 = vadd.f32 %v1753_v33, %v1086_v15 }
 0x1e1   : > { %v1786_v16 = vpop.f32.mrf.mxu0 }
 0x1e3   : > { %v1787_v27 = vpop.f32.mrf.mxu0 }
 0x1e4   : > { %v1788_v20 = vadd.f32 %v1787_v27, %v1786_v16 }
 0x1e6   : > { %v1362_v58 = vadd.f32 %v1788_v20, %v1194_v47 }
 0x1ea   : > { %v1821_v34 = vpop.f32.mrf.mxu1 }
 0x1ec   : > { %v1822_v40 = vpop.f32.mrf.mxu1 }
 0x1ed   : > { %v1823_v39 = vadd.f32 %v1822_v40, %v1821_v34 }
 0x1ef   : > { %v1466_v17 = vadd.f32 %v1823_v39, %v1362_v58 }
 0x1f1   : > { %1469 = vst [vmem:[%s219_s6] sm:$0xf] %v1466_v17 }
 0x1f2   : > { %2019 = shalt.err (!%p2016_p11)
}
 0x1f3   : > { %s2020_s10 = scalar_lea.hbm %s1484_s21, 64  ;;  %s2024_s8 = scalar_lea.hbm %s3795_s4, 256 }
 0x1f4   : > { %p2021_p7 = scmp.ne.s32.totalorder %s1484_s21, %s2020_s10  ;;  %p2025_p13 = scmp.lt.s32.totalorder %s1484_s21, %s3795_s4 }
 0x1f5   : > { %p2026_p4 = scmp.lt.s32.totalorder %s2024_s8, %s2020_s10 }
 0x1f6   : > { %p2022_p8 = pnand %p2021_p7, %p3796_p6 }
 0x1f7   : > { %p2027_p10 = por %p2026_p4, %p2025_p13 }
 0x1f8   : > { %p2023_p12 = pneg %p2022_p8 }
 0x1fa   : > { %p2028_p5 = pnand %p2027_p10, %p2023_p12 }
 0x1fc   : > { %2031 = shalt.err (!%p2028_p5)
}
 0x1fd   : > { %1836 = dma.vmem_to_hbm [thread:$0]  (%p3796_p6), %s1487_s28, 64, %s1484_s21, %s1471_s3  }
 0x1fe PF: > { %s3797_s7 = sld [smem:[#allocation14_spill]]  ;;  %p1850_p9 = scmp.ge.s32.totalorder %s2132_s24, 2 }
 0x1ff   : > { %s3798_s11 = sld [smem:[#allocation18_spill]] }
 0x204   : > { %s1498_s29 = sand.u32 1, %s3797_s7  }
 0x205   : > { %p3799_p0 = scmp.ne.s32.totalorder %s3798_s11, 0  ;;  %s1499_s6 = scalar_lea.sflag [#allocation6], %s1498_s29 }
 0x207   : > { %p1846_p2 = pnand %p1850_p9, %p3799_p0 }
 0x209   : > { %p1847_p3 = pneg %p1846_p2 }
 0x20b   : > { %2087 = dma.done.wait (%p1847_p3), %s1499_s6, 64  }
 0x20c   : > { %2089 = vsyncadd (%p1847_p3), %s1499_s6, 4294967232  ;;  %s26_s24 = sadd.s32 1, %s2132_s24   ;;  %s3800_s14 = sld [smem:[#allocation15_spill]] }
 0x20d   : > { %p23_p1 = scmp.ge.s32.totalorder %s26_s24, 6   ;;  %s3801_s28 = sld [smem:[#allocation16_spill]] }
 0x20e   : > { %s3802_s15 = smov %s2096_s16  ;;  %s3803_s16 = smov %s2100_s17 }
 0x20f   : > { %s3804_s17 = smov %s2305_s13  ;;  %s3805_s18 = smov %s2108_s19 }
 0x210   : > { %s3806_s19 = smov %s2112_s0  ;;  %s3807_s0 = smov %s2302_s12 }
 0x211   : > { %s3808_s20 = smov %s2124_s22  ;;  %s3809_s21 = smov %s2128_s23 }
 0x212   : > { %s3810_s22 = smov %s3800_s14  ;;  %25 = sbr.rel (!%p23_p1) target bundleno = 18 (0x12), region = 86 }
 0x213   : > { %s3811_s23 = smov %s3801_s28 }
 0x217   :  { %1504 = vsyncpa [#allocation5], 1 }
 0x218   :  { %1506 = vsyncpa [#allocation5 + $0x1], 1 }
 0x219   :  { %1507 = vsyncpa [#allocation8], 1 }
 0x21a   :  { %1509 = vsyncpa [#allocation8 + $0x1], 1 }
 0x21b   :  { %1510 = vsyncpa [#allocation6], 1 }
 0x21c   :  { %1512 = vsyncpa [#allocation6 + $0x1], 1 }

</bundles_post_ra>
